<compile_context>
chip_gen: v5e
topology: v5e:2x2
jax: 0.10.0
libtpu: 0.0.40
codegen_flags: <defaults>
</compile_context>

<pallas_src>
import math

import jax
import jax.numpy as jnp
from jax import lax
from jax.experimental import pallas as pl
from jax.experimental.pallas import tpu as pltpu

# ----------------------------- hyper-params ---------------------------------
DIM = 64                      # n_embd  (n_head = dim // 64)
LAYERS = 2                    # n_layer
NUM_GROUPS = 8
NUM_VECTORS = 8               # power of two (one-hot built with bitwise-and mask)
N_HEAD = DIM // 64            # == 1
HEAD_DIM = DIM // N_HEAD
N_INNER = DIM * 2
LN_EPS = 1e-5

B = 2                         # batch
S = 9                         # raw code sequence length
T = S - 1                     # transformer sequence length
BT = B * T
GV = NUM_GROUPS * NUM_VECTORS  # 64

GELU_C = math.sqrt(2.0 / math.pi)
NEG_BIG = -1e30
ATT_SCALE = 1.0 / math.sqrt(HEAD_DIM)

# ------------- packed-slab layout (lane offsets / row indices) ---------------
# bf16 weight slab (DIM rows):  [ emb_bd | wh | layer0: wqkv|wao|wfc | layer1: ... ]
OFF_EMB = 0
OFF_WH = DIM
OFF_L0 = 2 * DIM
LAYER_W = 3 * DIM + DIM + N_INNER            # 384 lanes per layer
SLAB_W = OFF_L0 + LAYERS * LAYER_W           # 896

# f32 slab (FWIDTH lanes):  [ wpe tiled over batch | per-layer rows | lnf / bh ]
FWIDTH = max(N_INNER, DIM)                   # 128
ROWS_PER_LAYER = 10   # ln1g ln1b bq bk bv bao ln2g ln2b bfc bmp
ROW_L0 = BT
ROW_FIN = BT + LAYERS * ROWS_PER_LAYER       # 36
NROWS_F = ROW_FIN + 3                        # + lnfg, lnfb, bh  -> 39


# ----------------------------- kernel helpers --------------------------------
def _layer_norm(x, g, b):
    mu = jnp.mean(x, axis=-1, keepdims=True)
    var = jnp.mean((x - mu) ** 2, axis=-1, keepdims=True)
    return (x - mu) * lax.rsqrt(var + LN_EPS) * g + b


def _gelu_new(x):
    return 0.5 * x * (1.0 + jnp.tanh(GELU_C * (x + 0.044715 * x ** 3)))


# ----------------------------- fused kernel ----------------------------------
def fused_kernel(codes_ref, w_ref, wmp_ref, f_ref, loss_ref):
    w = w_ref[...]            # (DIM, SLAB_W)   bf16 weight slab
    fs = f_ref[...]           # (NROWS_F, 128)  f32  LN/bias/wpe slab
    codes = codes_ref[...]    # (BT, 2*GV)      int32: inputs_rep | targets_rep

    # ---- in-kernel one-hots (NUM_VECTORS is a power of two) ----
    lane = lax.broadcasted_iota(jnp.int32, (BT, GV), 1)
    within = jnp.bitwise_and(lane, NUM_VECTORS - 1)          # lane index within group
    inputs_rep = codes[:, :GV]
    targets_rep = codes[:, GV:]
    oh = jnp.where(within == inputs_rep, 1.0, 0.0).astype(jnp.bfloat16)   # (BT, GV)
    tgt_oh = jnp.where(within == targets_rep, 1.0, 0.0)                   # (BT, GV) f32

    # ---- grouped embedding lookup + positional embedding ----
    emb = w[:GV, OFF_EMB:OFF_EMB + DIM]                      # block-diagonal (GV, DIM)
    h = jnp.dot(oh, emb, preferred_element_type=jnp.float32)  # (BT, DIM) f32
    h = h + fs[0:BT, 0:DIM]                                   # wpe already batch-tiled

    # ---- block-diagonal causal additive mask (B == 2 blocks of length T) ----
    row = lax.broadcasted_iota(jnp.int32, (BT, BT), 0)
    col = lax.broadcasted_iota(jnp.int32, (BT, BT), 1)
    blk_r = jnp.where(row >= T, 1, 0)
    blk_c = jnp.where(col >= T, 1, 0)
    keep = (blk_r == blk_c) & (col <= row)
    mask = jnp.where(keep, jnp.float32(0.0), jnp.float32(NEG_BIG))

    for l in range(LAYERS):
        base = OFF_L0 + l * LAYER_W
        rb = ROW_L0 + l * ROWS_PER_LAYER
        wqkv = w[:, base:base + 3 * DIM]                      # (DIM, 3*DIM)  (scale folded)
        wao = w[:, base + 3 * DIM:base + 4 * DIM]             # (DIM, DIM)
        wfc = w[:, base + 4 * DIM:base + 4 * DIM + N_INNER]   # (DIM, N_INNER)
        ln1g = fs[rb + 0:rb + 1, :DIM]
        ln1b = fs[rb + 1:rb + 2, :DIM]
        bq = fs[rb + 2:rb + 3, :DIM]
        bk = fs[rb + 3:rb + 4, :DIM]
        bv = fs[rb + 4:rb + 5, :DIM]
        bao = fs[rb + 5:rb + 6, :DIM]
        ln2g = fs[rb + 6:rb + 7, :DIM]
        ln2b = fs[rb + 7:rb + 8, :DIM]
        bfc = fs[rb + 8:rb + 9, :N_INNER]
        bmp = fs[rb + 9:rb + 10, :DIM]

        # ---- causal self-attention (single fused qkv matmul) ----
        a = _layer_norm(h, ln1g, ln1b).astype(jnp.bfloat16)
        qkv = jnp.dot(a, wqkv, preferred_element_type=jnp.float32)   # (BT, 3*DIM)
        q = qkv[:, 0:DIM] + bq                 # attention scale pre-folded into wq/bq
        k = qkv[:, DIM:2 * DIM] + bk
        v = qkv[:, 2 * DIM:3 * DIM] + bv
        # q . k^T without materializing the transpose
        scores = lax.dot_general(q.astype(jnp.bfloat16), k.astype(jnp.bfloat16),
                                 (((1,), (1,)), ((), ())),
                                 preferred_element_type=jnp.float32)
        scores = scores + mask
        scores = scores - jnp.max(scores, axis=-1, keepdims=True)
        p = jnp.exp(scores)
        p = p / jnp.sum(p, axis=-1, keepdims=True)             # exact softmax divide
        ctx = jnp.dot(p.astype(jnp.bfloat16), v.astype(jnp.bfloat16),
                      preferred_element_type=jnp.float32)
        attn = jnp.dot(ctx.astype(jnp.bfloat16), wao,
                       preferred_element_type=jnp.float32) + bao
        h = h + attn

        # ---- MLP block ----
        a2 = _layer_norm(h, ln2g, ln2b).astype(jnp.bfloat16)
        ff = jnp.dot(a2, wfc, preferred_element_type=jnp.float32) + bfc
        ff = _gelu_new(ff).astype(jnp.bfloat16)
        ff = jnp.dot(ff, wmp_ref[l], preferred_element_type=jnp.float32) + bmp
        h = h + ff

    lnfg = fs[ROW_FIN + 0:ROW_FIN + 1, :DIM]
    lnfb = fs[ROW_FIN + 1:ROW_FIN + 2, :DIM]
    bh = fs[ROW_FIN + 2:ROW_FIN + 3, :GV]
    h = _layer_norm(h, lnfg, lnfb)

    # ---- stacked heads + vectorized cross-entropy epilogue ----
    wh = w[:, OFF_WH:OFF_WH + GV]                             # (DIM, G*V)
    logits = jnp.dot(h.astype(jnp.bfloat16), wh,
                     preferred_element_type=jnp.float32) + bh  # (BT, GV)

    rowmax = jnp.max(logits, axis=-1, keepdims=True)          # (BT, 1)
    e = jnp.exp(logits - rowmax)                              # (BT, GV)
    # block-diagonal group selector sel[i, g] = 1 iff lane i belongs to group g
    ri = lax.broadcasted_iota(jnp.int32, (GV, NUM_GROUPS), 0)
    cj = lax.broadcasted_iota(jnp.int32, (GV, NUM_GROUPS), 1)
    d = ri - cj * NUM_VECTORS
    sel = jnp.where((d >= 0) & (d < NUM_VECTORS), 1.0, 0.0)    # (GV, G) f32
    gs = jnp.dot(e, sel, preferred_element_type=jnp.float32)   # per-group exp-sums (BT, G)

    lse_sum = NUM_GROUPS * rowmax + jnp.sum(jnp.log(gs), axis=-1, keepdims=True)
    tgt_sum = jnp.sum(tgt_oh * logits, axis=-1, keepdims=True)
    total = jnp.sum(lse_sum - tgt_sum)
    loss_ref[...] = jnp.full((1, 1), total / (NUM_GROUPS * BT), jnp.float32)


# ----------------------------- parameter init + packing ----------------------
def init_params(key):
    ks = jax.random.split(key, 8)
    std = 0.02

    def nrm(k, shape):
        return jax.random.normal(k, shape, jnp.float32) * std

    dpg = DIM // NUM_GROUPS
    emb = nrm(ks[0], (NUM_GROUPS, NUM_VECTORS, dpg))
    # block-diagonal grouped embedding (GV, DIM)
    emb_bd = jnp.zeros((GV, DIM), jnp.float32)
    for g in range(NUM_GROUPS):
        emb_bd = emb_bd.at[g * NUM_VECTORS:(g + 1) * NUM_VECTORS,
                           g * dpg:(g + 1) * dpg].set(emb[g])

    wpe = nrm(ks[1], (T, DIM))
    wqkv = nrm(ks[2], (LAYERS, DIM, 3 * DIM))
    wao = nrm(ks[3], (LAYERS, DIM, DIM))
    wfc = nrm(ks[4], (LAYERS, DIM, N_INNER))
    wmp = nrm(ks[5], (LAYERS, N_INNER, DIM))
    wh = nrm(ks[6], (DIM, GV))

    # fold the 1/sqrt(head_dim) attention scale into wq (biases are zero, so no
    # bias rescale is needed; rescale bq too if it ever becomes non-zero)
    wqkv = wqkv.at[:, :, :DIM].multiply(ATT_SCALE)

    # ---- bf16 weight slab ----
    wslab = jnp.zeros((DIM, SLAB_W), jnp.float32)
    wslab = wslab.at[:, OFF_EMB:OFF_EMB + DIM].set(emb_bd)
    wslab = wslab.at[:, OFF_WH:OFF_WH + GV].set(wh)
    for l in range(LAYERS):
        base = OFF_L0 + l * LAYER_W
        wslab = wslab.at[:, base:base + 3 * DIM].set(wqkv[l])
        wslab = wslab.at[:, base + 3 * DIM:base + 4 * DIM].set(wao[l])
        wslab = wslab.at[:, base + 4 * DIM:base + 4 * DIM + N_INNER].set(wfc[l])
    wslab = wslab.astype(jnp.bfloat16)

    # ---- f32 slab: tiled wpe, LN params, biases ----
    fslab = jnp.zeros((NROWS_F, FWIDTH), jnp.float32)
    fslab = fslab.at[0:BT, 0:DIM].set(jnp.tile(wpe, (B, 1)))
    for l in range(LAYERS):
        rb = ROW_L0 + l * ROWS_PER_LAYER
        fslab = fslab.at[rb + 0, 0:DIM].set(jnp.ones((DIM,), jnp.float32))   # ln1g
        # ln1b, bq, bk, bv, bao already zero
        fslab = fslab.at[rb + 6, 0:DIM].set(jnp.ones((DIM,), jnp.float32))   # ln2g
        # ln2b, bfc, bmp already zero
    fslab = fslab.at[ROW_FIN + 0, 0:DIM].set(jnp.ones((DIM,), jnp.float32))  # lnfg
    # lnfb, bh already zero

    return dict(wslab=wslab, wmp=wmp.astype(jnp.bfloat16), fslab=fslab)


# ----------------------------- forward wrapper --------------------------------
def mel2vec_codes_gpt_forward(codes, packed):
    # codes: (B, S, NUM_GROUPS) int32
    inputs = codes[:, :-1].astype(jnp.int32)                   # (B, T, G)
    targets = codes[:, 1:].astype(jnp.int32)                   # (B, T, G)

    def rep(x):   # (B, T, G) -> (BT, G*V), each code repeated V times along lanes
        return jnp.broadcast_to(
            x.reshape(BT, NUM_GROUPS, 1),
            (BT, NUM_GROUPS, NUM_VECTORS)).reshape(BT, GV)

    codes_pack = jnp.concatenate([rep(inputs), rep(targets)], axis=1)  # (BT, 2*GV) i32

    def full(shape):
        return pl.BlockSpec(shape, lambda i, _n=len(shape): (0,) * _n)

    loss = pl.pallas_call(
        fused_kernel,
        out_shape=jax.ShapeDtypeStruct((1, 1), jnp.float32),
        grid=(1,),
        in_specs=[
            full((BT, 2 * GV)),                 # codes_pack (int32)
            full((DIM, SLAB_W)),                # bf16 weight slab
            full((LAYERS, N_INNER, DIM)),       # wmp (bf16)
            full((NROWS_F, FWIDTH)),            # f32 slab
        ],
        out_specs=full((1, 1)),
        compiler_params=pltpu.CompilerParams(
            dimension_semantics=("arbitrary",)),
    )(codes_pack, packed["wslab"], packed["wmp"], packed["fslab"])

    return loss[0, 0]


# ----------------------------- main -------------------------------------------
if __name__ == "__main__":
    key = jax.random.PRNGKey(0)
    pkey, ckey = jax.random.split(key)
    packed = init_params(pkey)
    codes = jax.random.randint(ckey, (B, S, NUM_GROUPS), 0, NUM_VECTORS,
                               dtype=jnp.int32)

    loss = jax.jit(lambda c: mel2vec_codes_gpt_forward(c, packed))(codes)
    jax.block_until_ready(loss)
    print("KERNEL_OK")
</pallas_src>

<mosaic_0001>
module attributes {stable_mosaic.version = 11 : i64} {
  func.func @fused_kernel(%arg0: i32, %arg1: memref<16x128xi32, #tpu.memory_space<vmem>>, %arg2: memref<64x896xbf16, #tpu.memory_space<vmem>>, %arg3: memref<2x128x64xbf16, #tpu.memory_space<vmem>>, %arg4: memref<39x128xf32, #tpu.memory_space<vmem>>, %arg5: memref<1x1xf32, #tpu.memory_space<vmem>>) attributes {dimension_semantics = [#tpu.dimension_semantics<arbitrary>], iteration_bounds = array<i64: 1>, scalar_prefetch = 0 : i64, scratch_operands = 0 : i64, tpu.core_type = #tpu.core_type<tc>, window_params = [{pipeline_mode = #tpu.pipeline_mode<synchronous>, transform_indices = @transform_0, window_bounds = array<i64: 16, 128>}, {pipeline_mode = #tpu.pipeline_mode<synchronous>, transform_indices = @transform_1, window_bounds = array<i64: 64, 896>}, {pipeline_mode = #tpu.pipeline_mode<synchronous>, transform_indices = @transform_2, window_bounds = array<i64: 2, 128, 64>}, {pipeline_mode = #tpu.pipeline_mode<synchronous>, transform_indices = @transform_3, window_bounds = array<i64: 39, 128>}, {pipeline_mode = #tpu.pipeline_mode<synchronous>, transform_indices = @transform_4, window_bounds = array<i64: 1, 1>}]} {
    %c0 = arith.constant 0 : index
    %c0_0 = arith.constant 0 : index
    %0 = vector.load %arg2[%c0, %c0_0] : memref<64x896xbf16, #tpu.memory_space<vmem>>, vector<64x896xbf16>
    %c0_1 = arith.constant 0 : index
    %c0_2 = arith.constant 0 : index
    %1 = vector.load %arg4[%c0_1, %c0_2] : memref<39x128xf32, #tpu.memory_space<vmem>>, vector<39x128xf32>
    %c0_3 = arith.constant 0 : index
    %c0_4 = arith.constant 0 : index
    %2 = vector.load %arg1[%c0_3, %c0_4] : memref<16x128xi32, #tpu.memory_space<vmem>>, vector<16x128xi32>
    %3 = tpu.iota {dimensions = array<i32: 1>} : vector<16x64xi32>
    %c7_i32 = arith.constant 7 : i32
    %4 = vector.broadcast %c7_i32 : i32 to vector<16x64xi32>
    %5 = arith.andi %3, %4 : vector<16x64xi32>
    %6 = vector.extract_strided_slice %2 {offsets = [0, 0], sizes = [16, 64], strides = [1, 1]} : vector<16x128xi32> to vector<16x64xi32>
    %7 = vector.extract_strided_slice %2 {offsets = [0, 64], sizes = [16, 64], strides = [1, 1]} : vector<16x128xi32> to vector<16x64xi32>
    %8 = arith.cmpi eq, %5, %6 : vector<16x64xi32>
    %cst = arith.constant 1.000000e+00 : f32
    %cst_5 = arith.constant 0.000000e+00 : f32
    %9 = vector.broadcast %cst : f32 to vector<16x64xf32>
    %10 = vector.broadcast %cst_5 : f32 to vector<16x64xf32>
    %11 = arith.select %8, %9, %10 : vector<16x64xi1>, vector<16x64xf32>
    %12 = arith.truncf %11 : vector<16x64xf32> to vector<16x64xbf16>
    %13 = arith.cmpi eq, %5, %7 : vector<16x64xi32>
    %cst_6 = arith.constant 1.000000e+00 : f32
    %cst_7 = arith.constant 0.000000e+00 : f32
    %14 = vector.broadcast %cst_6 : f32 to vector<16x64xf32>
    %15 = vector.broadcast %cst_7 : f32 to vector<16x64xf32>
    %16 = arith.select %13, %14, %15 : vector<16x64xi1>, vector<16x64xf32>
    %17 = vector.extract_strided_slice %0 {offsets = [0, 0], sizes = [64, 64], strides = [1, 1]} : vector<64x896xbf16> to vector<64x64xbf16>
    %cst_8 = arith.constant dense<0.000000e+00> : vector<16x64xf32>
    %18 = tpu.matmul %12, %17, %cst_8 {dimension_numbers = #tpu.dot_dimension_numbers<[1], [0], [0], [1], [0, 0, 1, 1], [], []>} : vector<16x64xbf16>, vector<64x64xbf16>, vector<16x64xf32> -> vector<16x64xf32>
    %19 = vector.extract_strided_slice %1 {offsets = [0, 0], sizes = [16, 64], strides = [1, 1]} : vector<39x128xf32> to vector<16x64xf32>
    %20 = arith.addf %18, %19 : vector<16x64xf32>
    %21 = tpu.iota {dimensions = array<i32: 0>} : vector<16x16xi32>
    %22 = tpu.iota {dimensions = array<i32: 1>} : vector<16x16xi32>
    %c8_i32 = arith.constant 8 : i32
    %23 = vector.broadcast %c8_i32 : i32 to vector<16x16xi32>
    %24 = arith.cmpi sge, %21, %23 : vector<16x16xi32>
    %c1_i32 = arith.constant 1 : i32
    %c0_i32 = arith.constant 0 : i32
    %25 = vector.broadcast %c1_i32 : i32 to vector<16x16xi32>
    %26 = vector.broadcast %c0_i32 : i32 to vector<16x16xi32>
    %27 = arith.select %24, %25, %26 : vector<16x16xi1>, vector<16x16xi32>
    %c8_i32_9 = arith.constant 8 : i32
    %28 = vector.broadcast %c8_i32_9 : i32 to vector<16x16xi32>
    %29 = arith.cmpi sge, %22, %28 : vector<16x16xi32>
    %c1_i32_10 = arith.constant 1 : i32
    %c0_i32_11 = arith.constant 0 : i32
    %30 = vector.broadcast %c1_i32_10 : i32 to vector<16x16xi32>
    %31 = vector.broadcast %c0_i32_11 : i32 to vector<16x16xi32>
    %32 = arith.select %29, %30, %31 : vector<16x16xi1>, vector<16x16xi32>
    %33 = arith.cmpi eq, %27, %32 : vector<16x16xi32>
    %34 = arith.cmpi sle, %22, %21 : vector<16x16xi32>
    %35 = arith.andi %33, %34 : vector<16x16xi1>
    %cst_12 = arith.constant 0.000000e+00 : f32
    %cst_13 = arith.constant -1.000000e+30 : f32
    %36 = vector.broadcast %cst_12 : f32 to vector<16x16xf32>
    %37 = vector.broadcast %cst_13 : f32 to vector<16x16xf32>
    %38 = arith.select %35, %36, %37 : vector<16x16xi1>, vector<16x16xf32>
    %39 = vector.extract_strided_slice %0 {offsets = [0, 128], sizes = [64, 192], strides = [1, 1]} : vector<64x896xbf16> to vector<64x192xbf16>
    %40 = vector.extract_strided_slice %0 {offsets = [0, 320], sizes = [64, 64], strides = [1, 1]} : vector<64x896xbf16> to vector<64x64xbf16>
    %41 = vector.extract_strided_slice %0 {offsets = [0, 384], sizes = [64, 128], strides = [1, 1]} : vector<64x896xbf16> to vector<64x128xbf16>
    %42 = vector.extract_strided_slice %1 {offsets = [16, 0], sizes = [1, 64], strides = [1, 1]} : vector<39x128xf32> to vector<1x64xf32>
    %43 = vector.extract_strided_slice %1 {offsets = [17, 0], sizes = [1, 64], strides = [1, 1]} : vector<39x128xf32> to vector<1x64xf32>
    %44 = vector.extract_strided_slice %1 {offsets = [18, 0], sizes = [1, 64], strides = [1, 1]} : vector<39x128xf32> to vector<1x64xf32>
    %45 = vector.extract_strided_slice %1 {offsets = [19, 0], sizes = [1, 64], strides = [1, 1]} : vector<39x128xf32> to vector<1x64xf32>
    %46 = vector.extract_strided_slice %1 {offsets = [20, 0], sizes = [1, 64], strides = [1, 1]} : vector<39x128xf32> to vector<1x64xf32>
    %47 = vector.extract_strided_slice %1 {offsets = [21, 0], sizes = [1, 64], strides = [1, 1]} : vector<39x128xf32> to vector<1x64xf32>
    %48 = vector.extract_strided_slice %1 {offsets = [22, 0], sizes = [1, 64], strides = [1, 1]} : vector<39x128xf32> to vector<1x64xf32>
    %49 = vector.extract_strided_slice %1 {offsets = [23, 0], sizes = [1, 64], strides = [1, 1]} : vector<39x128xf32> to vector<1x64xf32>
    %50 = vector.extract_strided_slice %1 {offsets = [24, 0], sizes = [1, 128], strides = [1, 1]} : vector<39x128xf32> to vector<1x128xf32>
    %51 = vector.extract_strided_slice %1 {offsets = [25, 0], sizes = [1, 64], strides = [1, 1]} : vector<39x128xf32> to vector<1x64xf32>
    %cst_14 = arith.constant dense<0.000000e+00> : vector<16xf32>
    %52 = vector.multi_reduction <add>, %20, %cst_14 [1] : vector<16x64xf32> to vector<16xf32>
    %53 = vector.shape_cast %52 : vector<16xf32> to vector<16x1xf32>
    %cst_15 = arith.constant 6.400000e+01 : f32
    %54 = vector.broadcast %cst_15 : f32 to vector<16x1xf32>
    %55 = arith.divf %53, %54 : vector<16x1xf32>
    %56 = vector.broadcast %55 : vector<16x1xf32> to vector<16x64xf32>
    %57 = arith.subf %20, %56 : vector<16x64xf32>
    %58 = arith.mulf %57, %57 : vector<16x64xf32>
    %cst_16 = arith.constant dense<0.000000e+00> : vector<16xf32>
    %59 = vector.multi_reduction <add>, %58, %cst_16 [1] : vector<16x64xf32> to vector<16xf32>
    %60 = vector.shape_cast %59 : vector<16xf32> to vector<16x1xf32>
    %cst_17 = arith.constant 6.400000e+01 : f32
    %61 = vector.broadcast %cst_17 : f32 to vector<16x1xf32>
    %62 = arith.divf %60, %61 : vector<16x1xf32>
    %63 = vector.broadcast %55 : vector<16x1xf32> to vector<16x64xf32>
    %64 = arith.subf %20, %63 : vector<16x64xf32>
    %cst_18 = arith.constant 9.99999974E-6 : f32
    %65 = vector.broadcast %cst_18 : f32 to vector<16x1xf32>
    %66 = arith.addf %62, %65 : vector<16x1xf32>
    %67 = math.rsqrt %66 : vector<16x1xf32>
    %68 = vector.broadcast %67 : vector<16x1xf32> to vector<16x64xf32>
    %69 = arith.mulf %64, %68 : vector<16x64xf32>
    %70 = vector.broadcast %42 : vector<1x64xf32> to vector<16x64xf32>
    %71 = arith.mulf %69, %70 : vector<16x64xf32>
    %72 = vector.broadcast %43 : vector<1x64xf32> to vector<16x64xf32>
    %73 = arith.addf %71, %72 : vector<16x64xf32>
    %74 = arith.truncf %73 : vector<16x64xf32> to vector<16x64xbf16>
    %cst_19 = arith.constant dense<0.000000e+00> : vector<16x192xf32>
    %75 = tpu.matmul %74, %39, %cst_19 {dimension_numbers = #tpu.dot_dimension_numbers<[1], [0], [0], [1], [0, 0, 1, 1], [], []>} : vector<16x64xbf16>, vector<64x192xbf16>, vector<16x192xf32> -> vector<16x192xf32>
    %76 = vector.extract_strided_slice %75 {offsets = [0, 0], sizes = [16, 64], strides = [1, 1]} : vector<16x192xf32> to vector<16x64xf32>
    %77 = vector.broadcast %44 : vector<1x64xf32> to vector<16x64xf32>
    %78 = arith.addf %76, %77 : vector<16x64xf32>
    %79 = vector.extract_strided_slice %75 {offsets = [0, 64], sizes = [16, 64], strides = [1, 1]} : vector<16x192xf32> to vector<16x64xf32>
    %80 = vector.broadcast %45 : vector<1x64xf32> to vector<16x64xf32>
    %81 = arith.addf %79, %80 : vector<16x64xf32>
    %82 = vector.extract_strided_slice %75 {offsets = [0, 128], sizes = [16, 64], strides = [1, 1]} : vector<16x192xf32> to vector<16x64xf32>
    %83 = vector.broadcast %46 : vector<1x64xf32> to vector<16x64xf32>
    %84 = arith.addf %82, %83 : vector<16x64xf32>
    %85 = arith.truncf %78 : vector<16x64xf32> to vector<16x64xbf16>
    %86 = arith.truncf %81 : vector<16x64xf32> to vector<16x64xbf16>
    %cst_20 = arith.constant dense<0.000000e+00> : vector<16x16xf32>
    %87 = tpu.matmul %85, %86, %cst_20 {dimension_numbers = #tpu.dot_dimension_numbers<[1], [1], [0], [0], [0, 0, 1, 0], [], []>} : vector<16x64xbf16>, vector<16x64xbf16>, vector<16x16xf32> -> vector<16x16xf32>
    %88 = arith.addf %87, %38 : vector<16x16xf32>
    %cst_21 = arith.constant dense<0xFF800000> : vector<16xf32>
    %89 = vector.multi_reduction <maximumf>, %88, %cst_21 [1] : vector<16x16xf32> to vector<16xf32>
    %90 = vector.shape_cast %89 : vector<16xf32> to vector<16x1xf32>
    %91 = vector.broadcast %90 : vector<16x1xf32> to vector<16x16xf32>
    %92 = arith.subf %88, %91 : vector<16x16xf32>
    %93 = math.exp %92 : vector<16x16xf32>
    %cst_22 = arith.constant dense<0.000000e+00> : vector<16xf32>
    %94 = vector.multi_reduction <add>, %93, %cst_22 [1] : vector<16x16xf32> to vector<16xf32>
    %95 = vector.shape_cast %94 : vector<16xf32> to vector<16x1xf32>
    %96 = vector.broadcast %95 : vector<16x1xf32> to vector<16x16xf32>
    %97 = arith.divf %93, %96 : vector<16x16xf32>
    %98 = arith.truncf %97 : vector<16x16xf32> to vector<16x16xbf16>
    %99 = arith.truncf %84 : vector<16x64xf32> to vector<16x64xbf16>
    %cst_23 = arith.constant dense<0.000000e+00> : vector<16x64xf32>
    %100 = tpu.matmul %98, %99, %cst_23 {dimension_numbers = #tpu.dot_dimension_numbers<[1], [0], [0], [1], [0, 0, 1, 1], [], []>} : vector<16x16xbf16>, vector<16x64xbf16>, vector<16x64xf32> -> vector<16x64xf32>
    %101 = arith.truncf %100 : vector<16x64xf32> to vector<16x64xbf16>
    %cst_24 = arith.constant dense<0.000000e+00> : vector<16x64xf32>
    %102 = tpu.matmul %101, %40, %cst_24 {dimension_numbers = #tpu.dot_dimension_numbers<[1], [0], [0], [1], [0, 0, 1, 1], [], []>} : vector<16x64xbf16>, vector<64x64xbf16>, vector<16x64xf32> -> vector<16x64xf32>
    %103 = vector.broadcast %47 : vector<1x64xf32> to vector<16x64xf32>
    %104 = arith.addf %102, %103 : vector<16x64xf32>
    %105 = arith.addf %20, %104 : vector<16x64xf32>
    %cst_25 = arith.constant dense<0.000000e+00> : vector<16xf32>
    %106 = vector.multi_reduction <add>, %105, %cst_25 [1] : vector<16x64xf32> to vector<16xf32>
    %107 = vector.shape_cast %106 : vector<16xf32> to vector<16x1xf32>
    %cst_26 = arith.constant 6.400000e+01 : f32
    %108 = vector.broadcast %cst_26 : f32 to vector<16x1xf32>
    %109 = arith.divf %107, %108 : vector<16x1xf32>
    %110 = vector.broadcast %109 : vector<16x1xf32> to vector<16x64xf32>
    %111 = arith.subf %105, %110 : vector<16x64xf32>
    %112 = arith.mulf %111, %111 : vector<16x64xf32>
    %cst_27 = arith.constant dense<0.000000e+00> : vector<16xf32>
    %113 = vector.multi_reduction <add>, %112, %cst_27 [1] : vector<16x64xf32> to vector<16xf32>
    %114 = vector.shape_cast %113 : vector<16xf32> to vector<16x1xf32>
    %cst_28 = arith.constant 6.400000e+01 : f32
    %115 = vector.broadcast %cst_28 : f32 to vector<16x1xf32>
    %116 = arith.divf %114, %115 : vector<16x1xf32>
    %117 = vector.broadcast %109 : vector<16x1xf32> to vector<16x64xf32>
    %118 = arith.subf %105, %117 : vector<16x64xf32>
    %cst_29 = arith.constant 9.99999974E-6 : f32
    %119 = vector.broadcast %cst_29 : f32 to vector<16x1xf32>
    %120 = arith.addf %116, %119 : vector<16x1xf32>
    %121 = math.rsqrt %120 : vector<16x1xf32>
    %122 = vector.broadcast %121 : vector<16x1xf32> to vector<16x64xf32>
    %123 = arith.mulf %118, %122 : vector<16x64xf32>
    %124 = vector.broadcast %48 : vector<1x64xf32> to vector<16x64xf32>
    %125 = arith.mulf %123, %124 : vector<16x64xf32>
    %126 = vector.broadcast %49 : vector<1x64xf32> to vector<16x64xf32>
    %127 = arith.addf %125, %126 : vector<16x64xf32>
    %128 = arith.truncf %127 : vector<16x64xf32> to vector<16x64xbf16>
    %cst_30 = arith.constant dense<0.000000e+00> : vector<16x128xf32>
    %129 = tpu.matmul %128, %41, %cst_30 {dimension_numbers = #tpu.dot_dimension_numbers<[1], [0], [0], [1], [0, 0, 1, 1], [], []>} : vector<16x64xbf16>, vector<64x128xbf16>, vector<16x128xf32> -> vector<16x128xf32>
    %130 = vector.broadcast %50 : vector<1x128xf32> to vector<16x128xf32>
    %131 = arith.addf %129, %130 : vector<16x128xf32>
    %cst_31 = arith.constant 5.000000e-01 : f32
    %132 = vector.broadcast %cst_31 : f32 to vector<16x128xf32>
    %133 = arith.mulf %132, %131 : vector<16x128xf32>
    %134 = arith.mulf %131, %131 : vector<16x128xf32>
    %135 = arith.mulf %131, %134 : vector<16x128xf32>
    %cst_32 = arith.constant 4.471500e-02 : f32
    %136 = vector.broadcast %cst_32 : f32 to vector<16x128xf32>
    %137 = arith.mulf %136, %135 : vector<16x128xf32>
    %138 = arith.addf %131, %137 : vector<16x128xf32>
    %cst_33 = arith.constant 0.797884583 : f32
    %139 = vector.broadcast %cst_33 : f32 to vector<16x128xf32>
    %140 = arith.mulf %139, %138 : vector<16x128xf32>
    %141 = math.tanh %140 : vector<16x128xf32>
    %cst_34 = arith.constant 1.000000e+00 : f32
    %142 = vector.broadcast %cst_34 : f32 to vector<16x128xf32>
    %143 = arith.addf %142, %141 : vector<16x128xf32>
    %144 = arith.mulf %133, %143 : vector<16x128xf32>
    %145 = arith.truncf %144 : vector<16x128xf32> to vector<16x128xbf16>
    %c0_35 = arith.constant 0 : index
    %c0_36 = arith.constant 0 : index
    %c0_37 = arith.constant 0 : index
    %146 = vector.load %arg3[%c0_35, %c0_36, %c0_37] : memref<2x128x64xbf16, #tpu.memory_space<vmem>>, vector<1x128x64xbf16>
    %147 = vector.shape_cast %146 : vector<1x128x64xbf16> to vector<128x64xbf16>
    %cst_38 = arith.constant dense<0.000000e+00> : vector<16x64xf32>
    %148 = tpu.matmul %145, %147, %cst_38 {dimension_numbers = #tpu.dot_dimension_numbers<[1], [0], [0], [1], [0, 0, 1, 1], [], []>} : vector<16x128xbf16>, vector<128x64xbf16>, vector<16x64xf32> -> vector<16x64xf32>
    %149 = vector.broadcast %51 : vector<1x64xf32> to vector<16x64xf32>
    %150 = arith.addf %148, %149 : vector<16x64xf32>
    %151 = arith.addf %105, %150 : vector<16x64xf32>
    %152 = vector.extract_strided_slice %0 {offsets = [0, 512], sizes = [64, 192], strides = [1, 1]} : vector<64x896xbf16> to vector<64x192xbf16>
    %153 = vector.extract_strided_slice %0 {offsets = [0, 704], sizes = [64, 64], strides = [1, 1]} : vector<64x896xbf16> to vector<64x64xbf16>
    %154 = vector.extract_strided_slice %0 {offsets = [0, 768], sizes = [64, 128], strides = [1, 1]} : vector<64x896xbf16> to vector<64x128xbf16>
    %155 = vector.extract_strided_slice %1 {offsets = [26, 0], sizes = [1, 64], strides = [1, 1]} : vector<39x128xf32> to vector<1x64xf32>
    %156 = vector.extract_strided_slice %1 {offsets = [27, 0], sizes = [1, 64], strides = [1, 1]} : vector<39x128xf32> to vector<1x64xf32>
    %157 = vector.extract_strided_slice %1 {offsets = [28, 0], sizes = [1, 64], strides = [1, 1]} : vector<39x128xf32> to vector<1x64xf32>
    %158 = vector.extract_strided_slice %1 {offsets = [29, 0], sizes = [1, 64], strides = [1, 1]} : vector<39x128xf32> to vector<1x64xf32>
    %159 = vector.extract_strided_slice %1 {offsets = [30, 0], sizes = [1, 64], strides = [1, 1]} : vector<39x128xf32> to vector<1x64xf32>
    %160 = vector.extract_strided_slice %1 {offsets = [31, 0], sizes = [1, 64], strides = [1, 1]} : vector<39x128xf32> to vector<1x64xf32>
    %161 = vector.extract_strided_slice %1 {offsets = [32, 0], sizes = [1, 64], strides = [1, 1]} : vector<39x128xf32> to vector<1x64xf32>
    %162 = vector.extract_strided_slice %1 {offsets = [33, 0], sizes = [1, 64], strides = [1, 1]} : vector<39x128xf32> to vector<1x64xf32>
    %163 = vector.extract_strided_slice %1 {offsets = [34, 0], sizes = [1, 128], strides = [1, 1]} : vector<39x128xf32> to vector<1x128xf32>
    %164 = vector.extract_strided_slice %1 {offsets = [35, 0], sizes = [1, 64], strides = [1, 1]} : vector<39x128xf32> to vector<1x64xf32>
    %cst_39 = arith.constant dense<0.000000e+00> : vector<16xf32>
    %165 = vector.multi_reduction <add>, %151, %cst_39 [1] : vector<16x64xf32> to vector<16xf32>
    %166 = vector.shape_cast %165 : vector<16xf32> to vector<16x1xf32>
    %cst_40 = arith.constant 6.400000e+01 : f32
    %167 = vector.broadcast %cst_40 : f32 to vector<16x1xf32>
    %168 = arith.divf %166, %167 : vector<16x1xf32>
    %169 = vector.broadcast %168 : vector<16x1xf32> to vector<16x64xf32>
    %170 = arith.subf %151, %169 : vector<16x64xf32>
    %171 = arith.mulf %170, %170 : vector<16x64xf32>
    %cst_41 = arith.constant dense<0.000000e+00> : vector<16xf32>
    %172 = vector.multi_reduction <add>, %171, %cst_41 [1] : vector<16x64xf32> to vector<16xf32>
    %173 = vector.shape_cast %172 : vector<16xf32> to vector<16x1xf32>
    %cst_42 = arith.constant 6.400000e+01 : f32
    %174 = vector.broadcast %cst_42 : f32 to vector<16x1xf32>
    %175 = arith.divf %173, %174 : vector<16x1xf32>
    %176 = vector.broadcast %168 : vector<16x1xf32> to vector<16x64xf32>
    %177 = arith.subf %151, %176 : vector<16x64xf32>
    %cst_43 = arith.constant 9.99999974E-6 : f32
    %178 = vector.broadcast %cst_43 : f32 to vector<16x1xf32>
    %179 = arith.addf %175, %178 : vector<16x1xf32>
    %180 = math.rsqrt %179 : vector<16x1xf32>
    %181 = vector.broadcast %180 : vector<16x1xf32> to vector<16x64xf32>
    %182 = arith.mulf %177, %181 : vector<16x64xf32>
    %183 = vector.broadcast %155 : vector<1x64xf32> to vector<16x64xf32>
    %184 = arith.mulf %182, %183 : vector<16x64xf32>
    %185 = vector.broadcast %156 : vector<1x64xf32> to vector<16x64xf32>
    %186 = arith.addf %184, %185 : vector<16x64xf32>
    %187 = arith.truncf %186 : vector<16x64xf32> to vector<16x64xbf16>
    %cst_44 = arith.constant dense<0.000000e+00> : vector<16x192xf32>
    %188 = tpu.matmul %187, %152, %cst_44 {dimension_numbers = #tpu.dot_dimension_numbers<[1], [0], [0], [1], [0, 0, 1, 1], [], []>} : vector<16x64xbf16>, vector<64x192xbf16>, vector<16x192xf32> -> vector<16x192xf32>
    %189 = vector.extract_strided_slice %188 {offsets = [0, 0], sizes = [16, 64], strides = [1, 1]} : vector<16x192xf32> to vector<16x64xf32>
    %190 = vector.broadcast %157 : vector<1x64xf32> to vector<16x64xf32>
    %191 = arith.addf %189, %190 : vector<16x64xf32>
    %192 = vector.extract_strided_slice %188 {offsets = [0, 64], sizes = [16, 64], strides = [1, 1]} : vector<16x192xf32> to vector<16x64xf32>
    %193 = vector.broadcast %158 : vector<1x64xf32> to vector<16x64xf32>
    %194 = arith.addf %192, %193 : vector<16x64xf32>
    %195 = vector.extract_strided_slice %188 {offsets = [0, 128], sizes = [16, 64], strides = [1, 1]} : vector<16x192xf32> to vector<16x64xf32>
    %196 = vector.broadcast %159 : vector<1x64xf32> to vector<16x64xf32>
    %197 = arith.addf %195, %196 : vector<16x64xf32>
    %198 = arith.truncf %191 : vector<16x64xf32> to vector<16x64xbf16>
    %199 = arith.truncf %194 : vector<16x64xf32> to vector<16x64xbf16>
    %cst_45 = arith.constant dense<0.000000e+00> : vector<16x16xf32>
    %200 = tpu.matmul %198, %199, %cst_45 {dimension_numbers = #tpu.dot_dimension_numbers<[1], [1], [0], [0], [0, 0, 1, 0], [], []>} : vector<16x64xbf16>, vector<16x64xbf16>, vector<16x16xf32> -> vector<16x16xf32>
    %201 = arith.addf %200, %38 : vector<16x16xf32>
    %cst_46 = arith.constant dense<0xFF800000> : vector<16xf32>
    %202 = vector.multi_reduction <maximumf>, %201, %cst_46 [1] : vector<16x16xf32> to vector<16xf32>
    %203 = vector.shape_cast %202 : vector<16xf32> to vector<16x1xf32>
    %204 = vector.broadcast %203 : vector<16x1xf32> to vector<16x16xf32>
    %205 = arith.subf %201, %204 : vector<16x16xf32>
    %206 = math.exp %205 : vector<16x16xf32>
    %cst_47 = arith.constant dense<0.000000e+00> : vector<16xf32>
    %207 = vector.multi_reduction <add>, %206, %cst_47 [1] : vector<16x16xf32> to vector<16xf32>
    %208 = vector.shape_cast %207 : vector<16xf32> to vector<16x1xf32>
    %209 = vector.broadcast %208 : vector<16x1xf32> to vector<16x16xf32>
    %210 = arith.divf %206, %209 : vector<16x16xf32>
    %211 = arith.truncf %210 : vector<16x16xf32> to vector<16x16xbf16>
    %212 = arith.truncf %197 : vector<16x64xf32> to vector<16x64xbf16>
    %cst_48 = arith.constant dense<0.000000e+00> : vector<16x64xf32>
    %213 = tpu.matmul %211, %212, %cst_48 {dimension_numbers = #tpu.dot_dimension_numbers<[1], [0], [0], [1], [0, 0, 1, 1], [], []>} : vector<16x16xbf16>, vector<16x64xbf16>, vector<16x64xf32> -> vector<16x64xf32>
    %214 = arith.truncf %213 : vector<16x64xf32> to vector<16x64xbf16>
    %cst_49 = arith.constant dense<0.000000e+00> : vector<16x64xf32>
    %215 = tpu.matmul %214, %153, %cst_49 {dimension_numbers = #tpu.dot_dimension_numbers<[1], [0], [0], [1], [0, 0, 1, 1], [], []>} : vector<16x64xbf16>, vector<64x64xbf16>, vector<16x64xf32> -> vector<16x64xf32>
    %216 = vector.broadcast %160 : vector<1x64xf32> to vector<16x64xf32>
    %217 = arith.addf %215, %216 : vector<16x64xf32>
    %218 = arith.addf %151, %217 : vector<16x64xf32>
    %cst_50 = arith.constant dense<0.000000e+00> : vector<16xf32>
    %219 = vector.multi_reduction <add>, %218, %cst_50 [1] : vector<16x64xf32> to vector<16xf32>
    %220 = vector.shape_cast %219 : vector<16xf32> to vector<16x1xf32>
    %cst_51 = arith.constant 6.400000e+01 : f32
    %221 = vector.broadcast %cst_51 : f32 to vector<16x1xf32>
    %222 = arith.divf %220, %221 : vector<16x1xf32>
    %223 = vector.broadcast %222 : vector<16x1xf32> to vector<16x64xf32>
    %224 = arith.subf %218, %223 : vector<16x64xf32>
    %225 = arith.mulf %224, %224 : vector<16x64xf32>
    %cst_52 = arith.constant dense<0.000000e+00> : vector<16xf32>
    %226 = vector.multi_reduction <add>, %225, %cst_52 [1] : vector<16x64xf32> to vector<16xf32>
    %227 = vector.shape_cast %226 : vector<16xf32> to vector<16x1xf32>
    %cst_53 = arith.constant 6.400000e+01 : f32
    %228 = vector.broadcast %cst_53 : f32 to vector<16x1xf32>
    %229 = arith.divf %227, %228 : vector<16x1xf32>
    %230 = vector.broadcast %222 : vector<16x1xf32> to vector<16x64xf32>
    %231 = arith.subf %218, %230 : vector<16x64xf32>
    %cst_54 = arith.constant 9.99999974E-6 : f32
    %232 = vector.broadcast %cst_54 : f32 to vector<16x1xf32>
    %233 = arith.addf %229, %232 : vector<16x1xf32>
    %234 = math.rsqrt %233 : vector<16x1xf32>
    %235 = vector.broadcast %234 : vector<16x1xf32> to vector<16x64xf32>
    %236 = arith.mulf %231, %235 : vector<16x64xf32>
    %237 = vector.broadcast %161 : vector<1x64xf32> to vector<16x64xf32>
    %238 = arith.mulf %236, %237 : vector<16x64xf32>
    %239 = vector.broadcast %162 : vector<1x64xf32> to vector<16x64xf32>
    %240 = arith.addf %238, %239 : vector<16x64xf32>
    %241 = arith.truncf %240 : vector<16x64xf32> to vector<16x64xbf16>
    %cst_55 = arith.constant dense<0.000000e+00> : vector<16x128xf32>
    %242 = tpu.matmul %241, %154, %cst_55 {dimension_numbers = #tpu.dot_dimension_numbers<[1], [0], [0], [1], [0, 0, 1, 1], [], []>} : vector<16x64xbf16>, vector<64x128xbf16>, vector<16x128xf32> -> vector<16x128xf32>
    %243 = vector.broadcast %163 : vector<1x128xf32> to vector<16x128xf32>
    %244 = arith.addf %242, %243 : vector<16x128xf32>
    %cst_56 = arith.constant 5.000000e-01 : f32
    %245 = vector.broadcast %cst_56 : f32 to vector<16x128xf32>
    %246 = arith.mulf %245, %244 : vector<16x128xf32>
    %247 = arith.mulf %244, %244 : vector<16x128xf32>
    %248 = arith.mulf %244, %247 : vector<16x128xf32>
    %cst_57 = arith.constant 4.471500e-02 : f32
    %249 = vector.broadcast %cst_57 : f32 to vector<16x128xf32>
    %250 = arith.mulf %249, %248 : vector<16x128xf32>
    %251 = arith.addf %244, %250 : vector<16x128xf32>
    %cst_58 = arith.constant 0.797884583 : f32
    %252 = vector.broadcast %cst_58 : f32 to vector<16x128xf32>
    %253 = arith.mulf %252, %251 : vector<16x128xf32>
    %254 = math.tanh %253 : vector<16x128xf32>
    %cst_59 = arith.constant 1.000000e+00 : f32
    %255 = vector.broadcast %cst_59 : f32 to vector<16x128xf32>
    %256 = arith.addf %255, %254 : vector<16x128xf32>
    %257 = arith.mulf %246, %256 : vector<16x128xf32>
    %258 = arith.truncf %257 : vector<16x128xf32> to vector<16x128xbf16>
    %c1 = arith.constant 1 : index
    %c0_60 = arith.constant 0 : index
    %c0_61 = arith.constant 0 : index
    %259 = vector.load %arg3[%c1, %c0_60, %c0_61] : memref<2x128x64xbf16, #tpu.memory_space<vmem>>, vector<1x128x64xbf16>
    %260 = vector.shape_cast %259 : vector<1x128x64xbf16> to vector<128x64xbf16>
    %cst_62 = arith.constant dense<0.000000e+00> : vector<16x64xf32>
    %261 = tpu.matmul %258, %260, %cst_62 {dimension_numbers = #tpu.dot_dimension_numbers<[1], [0], [0], [1], [0, 0, 1, 1], [], []>} : vector<16x128xbf16>, vector<128x64xbf16>, vector<16x64xf32> -> vector<16x64xf32>
    %262 = vector.broadcast %164 : vector<1x64xf32> to vector<16x64xf32>
    %263 = arith.addf %261, %262 : vector<16x64xf32>
    %264 = arith.addf %218, %263 : vector<16x64xf32>
    %265 = vector.extract_strided_slice %1 {offsets = [36, 0], sizes = [1, 64], strides = [1, 1]} : vector<39x128xf32> to vector<1x64xf32>
    %266 = vector.extract_strided_slice %1 {offsets = [37, 0], sizes = [1, 64], strides = [1, 1]} : vector<39x128xf32> to vector<1x64xf32>
    %267 = vector.extract_strided_slice %1 {offsets = [38, 0], sizes = [1, 64], strides = [1, 1]} : vector<39x128xf32> to vector<1x64xf32>
    %cst_63 = arith.constant dense<0.000000e+00> : vector<16xf32>
    %268 = vector.multi_reduction <add>, %264, %cst_63 [1] : vector<16x64xf32> to vector<16xf32>
    %269 = vector.shape_cast %268 : vector<16xf32> to vector<16x1xf32>
    %cst_64 = arith.constant 6.400000e+01 : f32
    %270 = vector.broadcast %cst_64 : f32 to vector<16x1xf32>
    %271 = arith.divf %269, %270 : vector<16x1xf32>
    %272 = vector.broadcast %271 : vector<16x1xf32> to vector<16x64xf32>
    %273 = arith.subf %264, %272 : vector<16x64xf32>
    %274 = arith.mulf %273, %273 : vector<16x64xf32>
    %cst_65 = arith.constant dense<0.000000e+00> : vector<16xf32>
    %275 = vector.multi_reduction <add>, %274, %cst_65 [1] : vector<16x64xf32> to vector<16xf32>
    %276 = vector.shape_cast %275 : vector<16xf32> to vector<16x1xf32>
    %cst_66 = arith.constant 6.400000e+01 : f32
    %277 = vector.broadcast %cst_66 : f32 to vector<16x1xf32>
    %278 = arith.divf %276, %277 : vector<16x1xf32>
    %279 = vector.broadcast %271 : vector<16x1xf32> to vector<16x64xf32>
    %280 = arith.subf %264, %279 : vector<16x64xf32>
    %cst_67 = arith.constant 9.99999974E-6 : f32
    %281 = vector.broadcast %cst_67 : f32 to vector<16x1xf32>
    %282 = arith.addf %278, %281 : vector<16x1xf32>
    %283 = math.rsqrt %282 : vector<16x1xf32>
    %284 = vector.broadcast %283 : vector<16x1xf32> to vector<16x64xf32>
    %285 = arith.mulf %280, %284 : vector<16x64xf32>
    %286 = vector.broadcast %265 : vector<1x64xf32> to vector<16x64xf32>
    %287 = arith.mulf %285, %286 : vector<16x64xf32>
    %288 = vector.broadcast %266 : vector<1x64xf32> to vector<16x64xf32>
    %289 = arith.addf %287, %288 : vector<16x64xf32>
    %290 = vector.extract_strided_slice %0 {offsets = [0, 64], sizes = [64, 64], strides = [1, 1]} : vector<64x896xbf16> to vector<64x64xbf16>
    %291 = arith.truncf %289 : vector<16x64xf32> to vector<16x64xbf16>
    %cst_68 = arith.constant dense<0.000000e+00> : vector<16x64xf32>
    %292 = tpu.matmul %291, %290, %cst_68 {dimension_numbers = #tpu.dot_dimension_numbers<[1], [0], [0], [1], [0, 0, 1, 1], [], []>} : vector<16x64xbf16>, vector<64x64xbf16>, vector<16x64xf32> -> vector<16x64xf32>
    %293 = vector.broadcast %267 : vector<1x64xf32> to vector<16x64xf32>
    %294 = arith.addf %292, %293 : vector<16x64xf32>
    %cst_69 = arith.constant dense<0xFF800000> : vector<16xf32>
    %295 = vector.multi_reduction <maximumf>, %294, %cst_69 [1] : vector<16x64xf32> to vector<16xf32>
    %296 = vector.shape_cast %295 : vector<16xf32> to vector<16x1xf32>
    %297 = vector.broadcast %296 : vector<16x1xf32> to vector<16x64xf32>
    %298 = arith.subf %294, %297 : vector<16x64xf32>
    %299 = math.exp %298 : vector<16x64xf32>
    %300 = tpu.iota {dimensions = array<i32: 0>} : vector<64x8xi32>
    %301 = tpu.iota {dimensions = array<i32: 1>} : vector<64x8xi32>
    %c8_i32_70 = arith.constant 8 : i32
    %302 = vector.broadcast %c8_i32_70 : i32 to vector<64x8xi32>
    %303 = arith.muli %301, %302 : vector<64x8xi32>
    %304 = arith.subi %300, %303 : vector<64x8xi32>
    %c0_i32_71 = arith.constant 0 : i32
    %305 = vector.broadcast %c0_i32_71 : i32 to vector<64x8xi32>
    %306 = arith.cmpi sge, %304, %305 : vector<64x8xi32>
    %c8_i32_72 = arith.constant 8 : i32
    %307 = vector.broadcast %c8_i32_72 : i32 to vector<64x8xi32>
    %308 = arith.cmpi slt, %304, %307 : vector<64x8xi32>
    %309 = arith.andi %306, %308 : vector<64x8xi1>
    %cst_73 = arith.constant 1.000000e+00 : f32
    %cst_74 = arith.constant 0.000000e+00 : f32
    %310 = vector.broadcast %cst_73 : f32 to vector<64x8xf32>
    %311 = vector.broadcast %cst_74 : f32 to vector<64x8xf32>
    %312 = arith.select %309, %310, %311 : vector<64x8xi1>, vector<64x8xf32>
    %cst_75 = arith.constant dense<0.000000e+00> : vector<16x8xf32>
    %313 = tpu.matmul %299, %312, %cst_75 {dimension_numbers = #tpu.dot_dimension_numbers<[1], [0], [0], [1], [0, 0, 1, 1], [], []>} : vector<16x64xf32>, vector<64x8xf32>, vector<16x8xf32> -> vector<16x8xf32>
    %cst_76 = arith.constant 8.000000e+00 : f32
    %314 = vector.broadcast %cst_76 : f32 to vector<16x1xf32>
    %315 = arith.mulf %314, %296 : vector<16x1xf32>
    %316 = math.log %313 : vector<16x8xf32>
    %cst_77 = arith.constant dense<0.000000e+00> : vector<16xf32>
    %317 = vector.multi_reduction <add>, %316, %cst_77 [1] : vector<16x8xf32> to vector<16xf32>
    %318 = vector.shape_cast %317 : vector<16xf32> to vector<16x1xf32>
    %319 = arith.addf %315, %318 : vector<16x1xf32>
    %320 = arith.mulf %16, %294 : vector<16x64xf32>
    %cst_78 = arith.constant dense<0.000000e+00> : vector<16xf32>
    %321 = vector.multi_reduction <add>, %320, %cst_78 [1] : vector<16x64xf32> to vector<16xf32>
    %322 = vector.shape_cast %321 : vector<16xf32> to vector<16x1xf32>
    %323 = arith.subf %319, %322 : vector<16x1xf32>
    %324 = vector.shape_cast %323 : vector<16x1xf32> to vector<1x16x1xf32>
    %cst_79 = arith.constant dense<0.000000e+00> : vector<1xf32>
    %325 = vector.multi_reduction <add>, %324, %cst_79 [1, 2] : vector<1x16x1xf32> to vector<1xf32>
    %326 = vector.shape_cast %325 : vector<1xf32> to vector<1x1x1xf32>
    %327 = vector.extract %326[0, 0, 0] : f32 from vector<1x1x1xf32>
    %cst_80 = arith.constant 1.280000e+02 : f32
    %328 = arith.divf %327, %cst_80 : f32
    %329 = vector.broadcast %328 : f32 to vector<1x1xf32>
    %c0_81 = arith.constant 0 : index
    %c0_82 = arith.constant 0 : index
    %330 = vector.load %arg5[%c0_81, %c0_82] : memref<1x1xf32, #tpu.memory_space<vmem>>, vector<1x1xf32>
    tpu.vector_store %arg5[%c0_81, %c0_82], %329 {strides = array<i32>} : memref<1x1xf32, #tpu.memory_space<vmem>>, vector<1x1xf32>,
    return
  }
  func.func @transform_0(%arg0: i32) -> (i32, i32) {
    %c0_i32 = arith.constant 0 : i32
    %c0_i32_0 = arith.constant 0 : i32
    %c0_i32_1 = arith.constant 0 : i32
    return %c0_i32, %c0_i32_0 : i32, i32
  }
  func.func @transform_1(%arg0: i32) -> (i32, i32) {
    %c0_i32 = arith.constant 0 : i32
    %c0_i32_0 = arith.constant 0 : i32
    %c0_i32_1 = arith.constant 0 : i32
    return %c0_i32, %c0_i32_0 : i32, i32
  }
  func.func @transform_2(%arg0: i32) -> (i32, i32, i32) {
    %c0_i32 = arith.constant 0 : i32
    %c0_i32_0 = arith.constant 0 : i32
    %c0_i32_1 = arith.constant 0 : i32
    %c0_i32_2 = arith.constant 0 : i32
    return %c0_i32, %c0_i32_0, %c0_i32_1 : i32, i32, i32
  }
  func.func @transform_3(%arg0: i32) -> (i32, i32) {
    %c0_i32 = arith.constant 0 : i32
    %c0_i32_0 = arith.constant 0 : i32
    %c0_i32_1 = arith.constant 0 : i32
    return %c0_i32, %c0_i32_0 : i32, i32
  }
  func.func @transform_4(%arg0: i32) -> (i32, i32) {
    %c0_i32 = arith.constant 0 : i32
    %c0_i32_0 = arith.constant 0 : i32
    %c0_i32_1 = arith.constant 0 : i32
    return %c0_i32, %c0_i32_0 : i32, i32
  }
}

</mosaic_0001>

<bundles_post_ra>
// kernel: _lambda_.1
= control target key start
LH: loop header
LB: loop body
LE: loop exit
PB: predicated region body
PF: predicated region fallthrough
CT: control target
= control target key end

     0   :  { %v58_v3 = vlaneseq  ;;  %s2181_s0 = inlined_call_operand.vmem [shape: s32[16,128], index: 0, kind: input, shape index: {}]   ;;  %s2182_s1 = inlined_call_operand.vmem [shape: bf16[64,896], index: 1, kind: input, shape index: {}]   ;;  %s2183_s2 = inlined_call_operand.vmem [shape: bf16[2,128,64], index: 2, kind: input, shape index: {}]   ;;  %s2184_s3 = inlined_call_operand.vmem [shape: f32[39,128], index: 3, kind: input, shape index: {}]   ;;  %s2185_s4 = inlined_call_operand.hbm [shape: f32[1,1], index: 4, kind: output, shape index: {}]  }
   0x1   :  { %v1289_v0 = vld [vmem:[%s2182_s1 + $0xa8] sm:$0xf]  ;;  %v1517_v1 = vld [vmem:[%s2182_s1 + $0xc0] sm:$0xf0]  ;;  %v1285_v2 = vld [vmem:[%s2182_s1 + $0x70] sm:$0xf] }
   0x2   :  { %v1682_v4 = vor.u32 %v1517_v1, %v1289_v0  ;;  %v1510_v5 = vld [vmem:[%s2182_s1 + $0x88] sm:$0xf0]  ;;  %v1688_v6 = vand.u32 127, %v58_v3  ;;  %v1281_v8 = vld [vmem:[%s2182_s1 + $0x38] sm:$0xf] }
   0x3   :  { %v1691_v7 = vor.u32 %v1510_v5, %v1285_v2  ;;  %v1503_v9 = vld [vmem:[%s2182_s1 + $0x50] sm:$0xf0] }
   0x4   :  { %106 = vmatpush.bf16.msra.mxu0 %v1682_v4  ;;  %v1700_v10 = vand.u32 7, %v1688_v6 }
   0x5   :  { %9 = vsyncpa [#allocation3], 0  ;;  %v56_v11 = vld [vmem:[%s2181_s0] sm:$0xff]  ;;  %v57_v12 = vld [vmem:[%s2181_s0 + $0x8] sm:$0xff]  ;;  %v1709_v13 = vor.u32 %v1503_v9, %v1281_v8  ;;  %v1641_v17 = vmov 0.0   ;;  %vm98_vm2 = vcmask 523264  }
   0x6   :  { %v1277_v14 = vld [vmem:[%s2182_s1] sm:$0xf]  ;;  %v1496_v15 = vld [vmem:[%s2182_s1 + $0x18] sm:$0xf0]  ;;  %vm61_vm0 = vcmp.eq.s32.totalorder %v1700_v10, %v56_v11  ;;  %vm62_vm1 = vcmp.eq.s32.totalorder %v1700_v10, %v57_v12  ;;  %v52_v25 = vld [vmem:[%s2184_s3 + $0x8] sm:$0xff]  ;;  %v1642_v29 = vmov 64.0  }
   0x7   :  { %v1720_v16 = vor.u32 %v1496_v15, %v1277_v14  ;;  %v63_v18 = vsel %vm61_vm0, 1.0, %v1641_v17  ;;  %v64_v19 = vsel %vm62_vm1, 1.0, %v1641_v17  ;;  %v51_v21 = vld [vmem:[%s2184_s3] sm:$0xff]  ;;  %1557 = vrcp.f32 %v1642_v29  ;;  %v1514_v46 = vld [vmem:[%s2182_s1 + $0xac] sm:$0xf]  ;;  %v1820_v15 = vld [vmem:[%s2184_s3 + $0x10] sm:$0xff] }
   0x8   :  { %107 = vmatpush.bf16.msra.mxu0 %v1691_v7  ;;  %v65_v20 = vpack.c.bf16 %v64_v19, %v63_v18  ;;  %v1318_v47 = vld [vmem:[%s2182_s1 + $0xc4] sm:$0xf0]  ;;  %v1324_v48 = vld [vmem:[%s2182_s1 + $0xb0] sm:$0xf]  ;;  %v1518_v50 = vld [vmem:[%s2182_s1 + $0xc8] sm:$0xf0] }
   0x9   :  { %v1321_v49 = vor.u32 %v1514_v46, %v1318_v47  ;;  %v1768_v51 = vor.u32 %v1518_v50, %v1324_v48  ;;  %v1507_v52 = vld [vmem:[%s2182_s1 + $0x74] sm:$0xf]  ;;  %v1310_v53 = vld [vmem:[%s2182_s1 + $0x8c] sm:$0xf0]  ;;  %v1316_v54 = vld [vmem:[%s2182_s1 + $0x78] sm:$0xf] }
   0xa   :  { %v1313_v55 = vor.u32 %v1507_v52, %v1310_v53  ;;  %v1511_v56 = vld [vmem:[%s2182_s1 + $0x90] sm:$0xf0]  ;;  %v1500_v58 = vld [vmem:[%s2182_s1 + $0x3c] sm:$0xf]  ;;  %v1302_v59 = vld [vmem:[%s2182_s1 + $0x54] sm:$0xf0] }
   0xb   :  { %238 = vmatpush.bf16.msra.mxu1 %v1321_v49  ;;  %252 = vmatpush.bf16.msra.mxu2 %v1768_v51  ;;  %v1783_v57 = vor.u32 %v1511_v56, %v1316_v54  ;;  %v1308_v60 = vld [vmem:[%s2182_s1 + $0x40] sm:$0xf]  ;;  %v1305_v61 = vor.u32 %v1500_v58, %v1302_v59  ;;  %v1504_v62 = vld [vmem:[%s2182_s1 + $0x58] sm:$0xf0]  ;;  %v1493_v0 = vld [vmem:[%s2182_s1 + $0x4] sm:$0xf] }
   0xc   :  { %108 = vmatpush.bf16.msra.mxu0 %v1709_v13  ;;  %v1798_v63 = vor.u32 %v1504_v62, %v1308_v60  ;;  %v1294_v1 = vld [vmem:[%s2182_s1 + $0x1c] sm:$0xf0]  ;;  %v1300_v2 = vld [vmem:[%s2182_s1 + $0x8] sm:$0xf]  ;;  %v1497_v9 = vld [vmem:[%s2182_s1 + $0x20] sm:$0xf0] }
   0xd   :  { %v1558_v30 = vpop.eup %1557  ;;  %v1297_v8 = vor.u32 %v1493_v0, %v1294_v1  ;;  %v1814_v12 = vor.u32 %v1497_v9, %v1300_v2  ;;  %v265_v18 = vperm.slane %v1820_v15, 3  ;;  %s1643_s21 = smov 64   ;;  %v272_v58 = vperm.slane %v1820_v15, 4  ;;  %s1266_s26 = sshll.u32 %s2185_s4, 4  ;;  %s1267_s26 = int_to_ptr.hbm [resolvable:$true] %s1266_s26 }
   0xe   :  { %v140_v31 = vmul.f32 64.0, %v1558_v30  ;;  %vm144_vm3 = vweird.f32 %v1558_v30  ;;  %v262_v62 = vperm.slane %v1820_v15, 2  ;;  %v1837_v9 = vshrl.u32 %v58_v3, 7 }
   0xf   :  { %239 = vmatpush.bf16.msra.mxu1 %v1313_v55  ;;  %253 = vmatpush.bf16.msra.mxu2 %v1783_v57  ;;  %vm123_vm10 = vcmp.ge.s32.totalorder %v1688_v6, 8  ;;  %vm300_vm14 = vcmask 130048  }
  0x10   :  { %109 = vmatpush.bf16.msra.mxu0 %v1720_v16  ;;  %v141_v32 = vsub.f32 1.0, %v140_v31  ;;  %267 = vrot.lane.b32.xlu2 %v265_v18, %s1643_s21  ;;  %vm1521_vm11 = vmneg %vm123_vm10  ;;  %vm127_vm12 = vcmp.le.s32.totalorder %v1688_v6, %v1837_v9 }
  0x11   :  { %vm129_vm13 = vmand %vm1521_vm11, %vm127_vm12 }
  0x12   :  { %v142_v33 = vmul.f32 %v1558_v30, %v141_v32 }
  0x13   :  { %1291 = vmatmul.msk.bf16.vlgmr.msra.gmra.mxu0 %vm98_vm2, %v65_v20  ;;  %240 = vmatpush.bf16.msra.mxu1 %v1305_v61 }
  0x14   :  { %v143_v34 = vadd.f32 %v1558_v30, %v142_v33  ;;  %254 = vmatpush.bf16.msra.mxu2 %v1798_v63 }
  0x16   :  { %v1740_v35 = vsel %vm144_vm3, %v1558_v30, %v143_v34 }
  0x17   :  { %241 = vmatpush.bf16.msra.mxu1 %v1297_v8 }
  0x18   :  { %255 = vmatpush.bf16.msra.mxu2 %v1814_v12 }
  0x6a   :  { %v268_v50 = vpop.permute.xlu2 %267 }
  0x90   :  { %v111_v22 = vpop.f32.mrf.mxu0 }
  0x91   :  { %v1729_v23 = vadd.f32 %v111_v22, %v51_v21 }
  0x93   :  { %v133_v24 = vsel %vm98_vm2, %v1729_v23, 0.0 }
  0x94   :  { %134 = vadd.xlane.f32.xlu0 %v133_v24 }
  0x98   :  { %v113_v26 = vpop.f32.mrf.mxu0 }
  0x99   :  { %v1736_v27 = vadd.f32 %v113_v26, %v52_v25 }
  0x9b   :  { %v136_v28 = vsel %vm98_vm2, %v1736_v27, 0.0 }
  0x9c   :  { %137 = vadd.xlane.f32.xlu0 %v136_v28 }
 0x107   :  { %v135_v36 = vpop.xlane.xlu0 %134 }
 0x108   :  { %v146_v37 = vmul.f32 %v1740_v35, %v135_v36 }
 0x10a   :  { %v1744_v38 = vsub.f32 %v1729_v23, %v146_v37 }
 0x10c   :  { %v150_v39 = vmul.f32 %v1744_v38, %v1744_v38 }
 0x10e   :  { %v152_v40 = vsel %vm98_vm2, %v150_v39, 0.0  ;;  %v184_v39 = vperm.slane %v1820_v15, 0 }
 0x10f   :  { %153 = vadd.xlane.f32.xlu1 %v152_v40  ;;  %v138_v41 = vpop.xlane.xlu0 %137 }
 0x110   :  { %v147_v42 = vmul.f32 %v1740_v35, %v138_v41 }
 0x112   :  { %v1751_v43 = vsub.f32 %v1736_v27, %v147_v42 }
 0x114   :  { %v151_v44 = vmul.f32 %v1751_v43, %v1751_v43 }
 0x116   :  { %v155_v45 = vsel %vm98_vm2, %v151_v44, 0.0 }
 0x117   :  { %156 = vadd.xlane.f32.xlu1 %v155_v45  ;;  %v187_v45 = vperm.slane %v1820_v15, 1 }
 0x182   :  { %v154_v5 = vpop.xlane.xlu1 %153 }
 0x183   :  { %v158_v11 = vmul.f32 %v154_v5, %v1740_v35 }
 0x185   :  { %v160_v14 = vadd.f32 1e-05, %v158_v11  ;;  %v1843_v11 = vadd.s32 8, %v1837_v9 }
 0x187   :  { %1559 = vrsqrt.f32 %v160_v14  ;;  %vm168_vm5 = vweird.f32 %v160_v14  ;;  %vm128_vm15 = vcmp.le.s32.totalorder %v1688_v6, %v1843_v11 }
 0x188   :  { %vm130_vm0 = vmand %vm123_vm10, %vm128_vm15 }
 0x18a   :  { %v157_v19 = vpop.xlane.xlu1 %156 }
 0x18b   :  { %v159_v20 = vmul.f32 %v157_v19, %v1740_v35 }
 0x18d   :  { %v1560_v21 = vpop.eup %1559  ;;  %v161_v22 = vadd.f32 1e-05, %v159_v20 }
 0x18e   :  { %v163_v24 = vmul.f32 %v1560_v21, %v160_v14  ;;  %vm169_vm4 = vweird.f32 %v1560_v21  ;;  %v1644_v14 = vmov -1e+30  }
 0x18f   :  { %1561 = vrsqrt.f32 %v161_v22  ;;  %vm170_vm6 = vmor %vm168_vm5, %vm169_vm4  ;;  %vm178_vm8 = vweird.f32 %v161_v22  ;;  %v1845_v18 = vsel %vm129_vm13, 0.0, %v1644_v14 }
 0x190   :  { %v164_v25 = vmul.f32 %v1560_v21, %v163_v24 }
 0x192   :  { %v165_v26 = vmul.f32 0.5, %v164_v25 }
 0x194   :  { %v166_v28 = vsub.f32 1.5, %v165_v26 }
 0x195   :  { %v1562_v29 = vpop.eup %1561 }
 0x196   :  { %v167_v30 = vmul.f32 %v1560_v21, %v166_v28  ;;  %v173_v31 = vmul.f32 %v1562_v29, %v161_v22  ;;  %vm179_vm7 = vweird.f32 %v1562_v29 }
 0x197   :  { %vm180_vm9 = vmor %vm178_vm8, %vm179_vm7 }
 0x198   :  { %v174_v32 = vmul.f32 %v1562_v29, %v173_v31  ;;  %v171_v33 = vsel %vm170_vm6, %v1560_v21, %v167_v30  ;;  %v1851_v21 = vsel %vm130_vm0, 0.0, %v1644_v14  ;;  %v369_v14 = vperm.slane %v1820_v15, 5 }
 0x199   :  { %v182_v37 = vmul.f32 %v171_v33, %v1744_v38 }
 0x19a   :  { %v175_v34 = vmul.f32 0.5, %v174_v32 }
 0x19b   :  { %v185_v44 = vmul.f32 %v184_v39, %v182_v37 }
 0x19c   :  { %v176_v36 = vsub.f32 1.5, %v175_v34 }
 0x19d   :  { %v188_v47 = vadd.f32 %v187_v45, %v185_v44 }
 0x19e   :  { %v177_v40 = vmul.f32 %v1562_v29, %v176_v36 }
 0x1a0   :  { %v181_v41 = vsel %vm180_vm9, %v1562_v29, %v177_v40 }
 0x1a1   :  { %v183_v42 = vmul.f32 %v181_v41, %v1751_v43 }
 0x1a3   :  { %v186_v46 = vmul.f32 %v184_v39, %v183_v42 }
 0x1a5   :  { %v189_v48 = vadd.f32 %v187_v45, %v186_v46 }
 0x1a7   :  { %v190_v49 = vpack.c.bf16 %v189_v48, %v188_v47 }
 0x1a9   :  { %1326 = vmatmul.msk.bf16.vlgmr.msra.gmra.mxu1 %vm98_vm2, %v190_v49  ;;  %1327 = vmatmul.msk.bf16.vlgmr.msra.gmra.mxu2 %vm98_vm2, %v190_v49 }
 0x226   :  { %v243_v38 = vpop.f32.mrf.mxu1 }
 0x227   :  { %v270_v53 = vadd.f32 %v268_v50, %v243_v38  ;;  %v263_v5 = vadd.f32 %v262_v62, %v243_v38 }
 0x22c   :  { %v257_v43 = vpop.f32.mrf.mxu2 }
 0x22d   :  { %v273_v60 = vadd.f32 %v272_v58, %v257_v43 }
 0x22e   :  { %v245_v52 = vpop.f32.mrf.mxu1 }
 0x22f   :  { %v271_v54 = vadd.f32 %v268_v50, %v245_v52  ;;  %v264_v2 = vadd.f32 %v262_v62, %v245_v52 }
 0x231   :  { %v276_v55 = vpack.c.bf16 %v271_v54, %v270_v53  ;;  %v275_v8 = vpack.c.bf16 %v264_v2, %v263_v5 }
 0x233   :  { %278 = vrot.lane.b32.xlu2 %v276_v55, %s1643_s21 }
 0x234   :  { %v259_v56 = vpop.f32.mrf.mxu2 }
 0x235   :  { %v274_v59 = vadd.f32 %v272_v58, %v259_v56 }
 0x237   :  { %v350_v1 = vpack.c.bf16 %v274_v59, %v273_v60 }
 0x28d   :  { %v279_v61 = vpop.permute.xlu2 %278 }
 0x28e   :  { %v284_v0 = vsel %vm98_vm2, %v279_v61, 0 }
 0x28f   :  { %293 = vmatpush.bf16.xpose.msra.mxu3 %v284_v0 }
 0x296   :  { %1328 = vmatmul.msk.bf16.vlgmr.msra.gmra.mxu3 %vm98_vm2, %v275_v8 }
 0x297   :  { %361 = vmatpush.bf16.msrb.mxu3 %v350_v1 }
 0x319   :  { %v295_v19 = vpop.f32.mrf.mxu3 }
 0x31a   :  { %v296_v3 = vadd.f32 %v295_v19, %v1845_v18 }
 0x31c   :  { %v301_v20 = vsel %vm300_vm14, %v296_v3, -inf }
 0x31d   :  { %302 = vmax.xlane.f32.xlu0 %v301_v20 }
 0x321   :  { %v297_v22 = vpop.f32.mrf.mxu3 }
 0x322   :  { %v298_v24 = vadd.f32 %v297_v22, %v1851_v21 }
 0x324   :  { %v304_v25 = vsel %vm300_vm14, %v298_v24, -inf }
 0x325   :  { %305 = vmax.xlane.f32.xlu1 %v304_v25 }
 0x33e   :  { %376 = vrot.lane.b32.xlu1 %v1768_v51, %s1643_s21 }
 0x346   :  { %372 = vrot.lane.b32.xlu1 %v1798_v63, %s1643_s21 }
 0x390   :  { %v303_v26 = vpop.xlane.xlu0 %302 }
 0x391   :  { %v307_v28 = vsub.f32 %v296_v3, %v303_v26 }
 0x393   :  { %v309_v29 = vmul.f32 1.442695, %v307_v28 }
 0x395   :  { %1563 = vpow2.f32 %v309_v29 }
 0x398   :  { %v306_v30 = vpop.xlane.xlu1 %305 }
 0x399   :  { %v308_v31 = vsub.f32 %v298_v24, %v306_v30 }
 0x39b   :  { %v1564_v32 = vpop.eup %1563  ;;  %v311_v33 = vmul.f32 1.442695, %v308_v31 }
 0x39c   :  { %v313_v34 = vsel %vm300_vm14, %v1564_v32, 0.0 }
 0x39d   :  { %1565 = vpow2.f32 %v311_v33  ;;  %314 = vadd.xlane.f32.xlu2 %v313_v34 }
 0x3a3   :  { %v1566_v36 = vpop.eup %1565 }
 0x3a4   :  { %v316_v37 = vsel %vm300_vm14, %v1566_v36, 0.0 }
 0x3a5   :  { %317 = vadd.xlane.f32.xlu0 %v316_v37 }
 0x3b0   :  { %v377_v51 = vpop.permute.xlu1 %376 }
 0x3b1   :  { %389 = vmatpush.bf16.msrb.mxu0 %v377_v51  ;;  %v1515_v51 = vld [vmem:[%s2182_s1 + $0xb4] sm:$0xf] }
 0x3b8   :  { %v373_v0 = vpop.permute.xlu1 %372 }
 0x3b9   :  { %374 = vrot.lane.b32.xlu0 %v1783_v57, %s1643_s21 }
 0x3c1   :  { %370 = vrot.lane.b32.xlu0 %v1814_v12, %s1643_s21 }
 0x410   :  { %v315_v63 = vpop.xlane.xlu2 %314 }
 0x411   :  { %1567 = vrcp.f32 %v315_v63  ;;  %v330_v48 = vand.u32 2147483648, %v315_v63  ;;  %vm324_vm3 = vweird.f32 %v315_v63  ;;  %v328_v57 = vand.u32 2147483647, %v315_v63 }
 0x413   :  { %v331_v53 = vor.u32 1.1754944e-38, %v330_v48  ;;  %vm329_vm6 = vcmp.eq.f32.partialorder %v328_v57, 8.507059e+37  ;;  %v1331_v48 = vld [vmem:[%s2182_s1 + $0x24] sm:$0xf0] }
 0x417   :  { %v1568_v39 = vpop.eup %1567 }
 0x418   :  { %v320_v40 = vmul.f32 %v1568_v39, %v315_v63  ;;  %v318_v41 = vpop.xlane.xlu0 %317  ;;  %vm325_vm1 = vweird.f32 %v1568_v39  ;;  %v1343_v63 = vld [vmem:[%s2182_s1 + $0xcc] sm:$0xf0] }
 0x419   :  { %1569 = vrcp.f32 %v318_v41  ;;  %vm326_vm4 = vmor %vm324_vm3, %vm325_vm1  ;;  %v345_v12 = vand.u32 2147483648, %v318_v41  ;;  %v343_v52 = vand.u32 2147483647, %v318_v41  ;;  %vm339_vm7 = vweird.f32 %v318_v41 }
 0x41a   :  { %v321_v42 = vsub.f32 1.0, %v320_v40  ;;  %v1508_v40 = vld [vmem:[%s2182_s1 + $0x7c] sm:$0xf] }
 0x41b   :  { %v346_v55 = vor.u32 1.1754944e-38, %v345_v12  ;;  %vm344_vm9 = vcmp.eq.f32.partialorder %v343_v52, 8.507059e+37 }
 0x41c   :  { %v322_v44 = vmul.f32 %v1568_v39, %v321_v42 }
 0x41e   :  { %v323_v46 = vadd.f32 %v1568_v39, %v322_v44  ;;  %v1501_v44 = vld [vmem:[%s2182_s1 + $0x44] sm:$0xf] }
 0x41f   :  { %v1570_v45 = vpop.eup %1569 }
 0x420   :  { %v335_v47 = vmul.f32 %v1570_v45, %v318_v41  ;;  %v327_v38 = vsel %vm326_vm4, %v1568_v39, %v323_v46  ;;  %vm340_vm5 = vweird.f32 %v1570_v45  ;;  %v1346_v39 = vor.u32 %v1515_v51, %v1343_v63  ;;  %v1339_v41 = vld [vmem:[%s2182_s1 + $0x94] sm:$0xf0] }
 0x421   :  { %vm341_vm8 = vmor %vm339_vm7, %vm340_vm5  ;;  %v332_v43 = vsel %vm329_vm6, %v331_v53, %v327_v38  ;;  %v1342_v42 = vor.u32 %v1508_v40, %v1339_v41 }
 0x422   :  { %v336_v49 = vsub.f32 1.0, %v335_v47  ;;  %v333_v59 = vmul.f32 %v1564_v32, %v332_v43  ;;  %476 = vmatpush.bf16.msrb.mxu1 %v1346_v39  ;;  %v1494_v47 = vld [vmem:[%s2182_s1 + $0xc] sm:$0xf] }
 0x424   :  { %v337_v50 = vmul.f32 %v1570_v45, %v336_v49  ;;  %v1334_v49 = vor.u32 %v1494_v47, %v1331_v48 }
 0x426   :  { %v338_v54 = vadd.f32 %v1570_v45, %v337_v50  ;;  %477 = vmatpush.bf16.msrb.mxu1 %v1342_v42 }
 0x428   :  { %v342_v56 = vsel %vm341_vm8, %v1570_v45, %v338_v54  ;;  %v1335_v45 = vld [vmem:[%s2182_s1 + $0x5c] sm:$0xf0] }
 0x429   :  { %v347_v58 = vsel %vm344_vm9, %v346_v55, %v342_v56  ;;  %v1338_v46 = vor.u32 %v1501_v44, %v1335_v45 }
 0x42a   :  { %v348_v60 = vmul.f32 %v1566_v36, %v347_v58 }
 0x42b   :  { %v375_v61 = vpop.permute.xlu0 %374  ;;  %478 = vmatpush.bf16.msrb.mxu1 %v1338_v46 }
 0x42c   :  { %v349_v62 = vpack.c.bf16 %v348_v60, %v333_v59  ;;  %390 = vmatpush.bf16.msrb.mxu0 %v375_v61 }
 0x42e   :  { %1329 = vmatmul.msk.bf16.vlgmr.msrb.gmra.mxu3 %vm300_vm14, %v349_v62 }
 0x42f   :  { %479 = vmatpush.bf16.msrb.mxu1 %v1334_v49 }
 0x430   :  { %391 = vmatpush.bf16.msrb.mxu0 %v373_v0 }
 0x433   :  { %v371_v1 = vpop.permute.xlu0 %370 }
 0x434   :  { %392 = vmatpush.bf16.msrb.mxu0 %v371_v1 }
 0x4b1   :  { %v363_v2 = vpop.f32.mrf.mxu3 }
 0x4b9   :  { %v365_v5 = vpop.f32.mrf.mxu3 }
 0x4ba   :  { %v368_v8 = vpack.c.bf16 %v365_v5, %v363_v2 }
 0x4bc   :  { %1330 = vmatmul.msk.bf16.vlgmr.msrb.gmra.mxu0 %vm98_vm2, %v368_v8  ;;  %v445_v8 = vperm.slane %v1820_v15, 6 }
 0x539   :  { %v394_v19 = vpop.f32.mrf.mxu0 }
 0x53a   :  { %v395_v3 = vadd.f32 %v394_v19, %v369_v14 }
 0x53c   :  { %v1869_v20 = vadd.f32 %v395_v3, %v1729_v23 }
 0x53e   :  { %v401_v22 = vsel %vm98_vm2, %v1869_v20, 0.0 }
 0x53f   :  { %402 = vadd.xlane.f32.xlu1 %v401_v22 }
 0x541   :  { %v396_v24 = vpop.f32.mrf.mxu0 }
 0x542   :  { %v397_v25 = vadd.f32 %v396_v24, %v369_v14  ;;  %v448_v24 = vperm.slane %v1820_v15, 7  ;;  %v1527_v15 = vld [vmem:[%s2183_s2 + $0x28] sm:$0xff] }
 0x544   :  { %v1874_v26 = vadd.f32 %v397_v25, %v1736_v27 }
 0x546   :  { %v404_v28 = vsel %vm98_vm2, %v1874_v26, 0.0 }
 0x547   :  { %405 = vadd.xlane.f32.xlu2 %v404_v28 }
 0x5b2   :  { %v403_v29 = vpop.xlane.xlu1 %402 }
 0x5b3   :  { %v407_v30 = vmul.f32 %v403_v29, %v1740_v35 }
 0x5b5   :  { %v409_v31 = vsub.f32 %v1869_v20, %v407_v30 }
 0x5b7   :  { %v411_v23 = vmul.f32 %v409_v31, %v409_v31 }
 0x5b9   :  { %v413_v32 = vsel %vm98_vm2, %v411_v23, 0.0  ;;  %v1528_v23 = vld [vmem:[%s2183_s2 + $0x30] sm:$0xff] }
 0x5ba   :  { %v406_v33 = vpop.xlane.xlu2 %405  ;;  %414 = vadd.xlane.f32.xlu0 %v413_v32  ;;  %v1526_v32 = vld [vmem:[%s2183_s2 + $0x20] sm:$0xff] }
 0x5bb   :  { %v408_v34 = vmul.f32 %v406_v33, %v1740_v35  ;;  %v1525_v33 = vld [vmem:[%s2183_s2 + $0x18] sm:$0xff] }
 0x5bd   :  { %v410_v36 = vsub.f32 %v1874_v26, %v408_v34  ;;  %v1524_v34 = vld [vmem:[%s2183_s2 + $0x10] sm:$0xff] }
 0x5bf   :  { %v412_v27 = vmul.f32 %v410_v36, %v410_v36 }
 0x5c1   :  { %v416_v37 = vsel %vm98_vm2, %v412_v27, 0.0  ;;  %v1937_v27 = vld [vmem:[%s2184_s3 + $0x18] sm:$0xff] }
 0x5c2   :  { %417 = vadd.xlane.f32.xlu2 %v416_v37  ;;  %v1522_v37 = vld [vmem:[%s2183_s2] sm:$0xff]  ;;  %v452_v51 = vperm.slane %v1937_v27, 0 }
 0x62d   :  { %v415_v57 = vpop.xlane.xlu0 %414 }
 0x62e   :  { %v419_v12 = vmul.f32 %v415_v57, %v1740_v35 }
 0x630   :  { %v421_v38 = vadd.f32 1e-05, %v419_v12 }
 0x632   :  { %1571 = vrsqrt.f32 %v421_v38  ;;  %vm429_vm11 = vweird.f32 %v421_v38 }
 0x635   :  { %v418_v50 = vpop.xlane.xlu2 %417 }
 0x636   :  { %v420_v52 = vmul.f32 %v418_v50, %v1740_v35 }
 0x638   :  { %v1572_v53 = vpop.eup %1571  ;;  %v422_v54 = vadd.f32 1e-05, %v420_v52 }
 0x639   :  { %v424_v55 = vmul.f32 %v1572_v53, %v421_v38  ;;  %vm430_vm10 = vweird.f32 %v1572_v53 }
 0x63a   :  { %1573 = vrsqrt.f32 %v422_v54  ;;  %vm431_vm12 = vmor %vm429_vm11, %vm430_vm10  ;;  %vm439_vm15 = vweird.f32 %v422_v54 }
 0x63b   :  { %v425_v43 = vmul.f32 %v1572_v53, %v424_v55 }
 0x63d   :  { %v426_v56 = vmul.f32 0.5, %v425_v43 }
 0x63f   :  { %v427_v58 = vsub.f32 1.5, %v426_v56 }
 0x640   :  { %v1574_v59 = vpop.eup %1573 }
 0x641   :  { %v428_v60 = vmul.f32 %v1572_v53, %v427_v58  ;;  %v434_v61 = vmul.f32 %v1574_v59, %v422_v54  ;;  %vm440_vm13 = vweird.f32 %v1574_v59 }
 0x642   :  { %vm441_vm0 = vmor %vm439_vm15, %vm440_vm13 }
 0x643   :  { %v435_v62 = vmul.f32 %v1574_v59, %v434_v61  ;;  %v432_v0 = vsel %vm431_vm12, %v1572_v53, %v428_v60  ;;  %v521_v60 = vperm.slane %v1937_v27, 1 }
 0x644   :  { %v443_v5 = vmul.f32 %v432_v0, %v409_v31  ;;  %v1529_v31 = vld [vmem:[%s2183_s2 + $0x38] sm:$0xff] }
 0x645   :  { %v436_v1 = vmul.f32 0.5, %v435_v62  ;;  %570 = vmatpush.bf16.msrb.mxu2 %v1529_v31  ;;  %v1406_v31 = vld [vmem:[%s2182_s1 + $0xb8] sm:$0xf] }
 0x646   :  { %v446_v22 = vmul.f32 %v445_v8, %v443_v5 }
 0x647   :  { %v437_v2 = vsub.f32 1.5, %v436_v1 }
 0x648   :  { %v449_v28 = vadd.f32 %v448_v24, %v446_v22 }
 0x649   :  { %v438_v14 = vmul.f32 %v1574_v59, %v437_v2  ;;  %571 = vmatpush.bf16.msrb.mxu2 %v1528_v23  ;;  %v1519_v23 = vld [vmem:[%s2182_s1 + $0xd0] sm:$0xf0] }
 0x64b   :  { %v442_v19 = vsel %vm441_vm0, %v1574_v59, %v438_v14 }
 0x64c   :  { %v444_v3 = vmul.f32 %v442_v19, %v410_v36  ;;  %v1523_v36 = vld [vmem:[%s2183_s2 + $0x8] sm:$0xff] }
 0x64d   :  { %572 = vmatpush.bf16.msrb.mxu2 %v1527_v15  ;;  %v1516_v15 = vld [vmem:[%s2182_s1 + $0xbc] sm:$0xf] }
 0x64e   :  { %v447_v25 = vmul.f32 %v445_v8, %v444_v3 }
 0x650   :  { %v450_v29 = vadd.f32 %v448_v24, %v447_v25 }
 0x651   :  { %573 = vmatpush.bf16.msrb.mxu2 %v1526_v32  ;;  %v1407_v32 = vor.u32 %v1519_v23, %v1406_v31  ;;  %v633_v31 = vperm.slane %v1937_v27, 3 }
 0x652   :  { %v451_v30 = vpack.c.bf16 %v450_v29, %v449_v28 }
 0x653   :  { %684 = vmatpush.bf16.msra.mxu3 %v1407_v32 }
 0x654   :  { %1347 = vmatmul.msk.bf16.vlgmr.msrb.gmra.mxu1 %vm98_vm2, %v451_v30 }
 0x655   :  { %574 = vmatpush.bf16.msrb.mxu2 %v1525_v33  ;;  %v1408_v33 = vld [vmem:[%s2182_s1 + $0xd4] sm:$0xf0] }
 0x659   :  { %575 = vmatpush.bf16.msrb.mxu2 %v1524_v34  ;;  %v1411_v34 = vor.u32 %v1516_v15, %v1408_v33 }
 0x65b   :  { %698 = vmatpush.bf16.msra.mxu0 %v1411_v34 }
 0x65d   :  { %576 = vmatpush.bf16.msrb.mxu2 %v1523_v36  ;;  %v1398_v36 = vld [vmem:[%s2182_s1 + $0x80] sm:$0xf] }
 0x661   :  { %577 = vmatpush.bf16.msrb.mxu2 %v1522_v37  ;;  %v1512_v37 = vld [vmem:[%s2182_s1 + $0x98] sm:$0xf0] }
 0x6d1   :  { %v481_v63 = vpop.f32.mrf.mxu1 }
 0x6d2   :  { %v482_v39 = vadd.f32 %v481_v63, %v452_v51  ;;  %v1399_v63 = vor.u32 %v1512_v37, %v1398_v36  ;;  %v718_v37 = vperm.slane %v1937_v27, 6 }
 0x6d4   :  { %v488_v40 = vmul.f32 %v482_v39, %v482_v39  ;;  %v486_v54 = vmul.f32 0.5, %v482_v39  ;;  %685 = vmatpush.bf16.msra.mxu3 %v1399_v63 }
 0x6d6   :  { %v490_v41 = vmul.f32 %v488_v40, %v482_v39 }
 0x6d8   :  { %v492_v42 = vmul.f32 0.044715, %v490_v41  ;;  %v1390_v41 = vld [vmem:[%s2182_s1 + $0x48] sm:$0xf] }
 0x6d9   :  { %v483_v44 = vpop.f32.mrf.mxu1 }
 0x6da   :  { %v494_v45 = vadd.f32 %v492_v42, %v482_v39  ;;  %v484_v46 = vadd.f32 %v483_v44, %v452_v51  ;;  %v1509_v51 = vld [vmem:[%s2182_s1 + $0x84] sm:$0xf]  ;;  %v1400_v39 = vld [vmem:[%s2182_s1 + $0x9c] sm:$0xf0]  ;;  %v1502_v44 = vld [vmem:[%s2182_s1 + $0x4c] sm:$0xf] }
 0x6db   :  { %v1992_v40 = vor.u32 %v1509_v51, %v1400_v39  ;;  %v1505_v42 = vld [vmem:[%s2182_s1 + $0x60] sm:$0xf0] }
 0x6dc   :  { %v489_v47 = vmul.f32 %v484_v46, %v484_v46  ;;  %v496_v48 = vmul.f32 0.7978846, %v494_v45  ;;  %v487_v55 = vmul.f32 0.5, %v484_v46  ;;  %v1391_v45 = vor.u32 %v1505_v42, %v1390_v41 }
 0x6dd   :  { %699 = vmatpush.bf16.msra.mxu0 %v1992_v40 }
 0x6de   :  { %v491_v57 = vmul.f32 %v489_v47, %v484_v46  ;;  %1575 = vtanh.f32 %v496_v48  ;;  %686 = vmatpush.bf16.msra.mxu3 %v1391_v45 }
 0x6e0   :  { %v493_v49 = vmul.f32 0.044715, %v491_v57 }
 0x6e2   :  { %v495_v12 = vadd.f32 %v493_v49, %v484_v46  ;;  %v1392_v46 = vld [vmem:[%s2182_s1 + $0x64] sm:$0xf0]  ;;  %v1382_v49 = vld [vmem:[%s2182_s1 + $0x10] sm:$0xf] }
 0x6e3   :  { %v1395_v47 = vor.u32 %v1502_v44, %v1392_v46 }
 0x6e4   :  { %v497_v38 = vmul.f32 0.7978846, %v495_v12  ;;  %v1576_v50 = vpop.eup %1575  ;;  %v1498_v12 = vld [vmem:[%s2182_s1 + $0x28] sm:$0xf0] }
 0x6e5   :  { %v500_v52 = vadd.f32 1.0, %v1576_v50  ;;  %700 = vmatpush.bf16.msra.mxu0 %v1395_v47  ;;  %v1383_v50 = vor.u32 %v1498_v12, %v1382_v49 }
 0x6e6   :  { %1577 = vtanh.f32 %v497_v38  ;;  %v1495_v38 = vld [vmem:[%s2182_s1 + $0x14] sm:$0xf] }
 0x6e7   :  { %v502_v56 = vmul.f32 %v500_v52, %v486_v54  ;;  %v1384_v52 = vld [vmem:[%s2182_s1 + $0x2c] sm:$0xf0]  ;;  %687 = vmatpush.bf16.msra.mxu3 %v1383_v50 }
 0x6e8   :  { %v1387_v54 = vor.u32 %v1495_v38, %v1384_v52 }
 0x6ea   :  { %701 = vmatpush.bf16.msra.mxu0 %v1387_v54 }
 0x6ec   :  { %v1578_v53 = vpop.eup %1577 }
 0x6ed   :  { %v501_v43 = vadd.f32 1.0, %v1578_v53 }
 0x6ef   :  { %v503_v58 = vmul.f32 %v501_v43, %v487_v55  ;;  %v711_v55 = vperm.slane %v1937_v27, 5 }
 0x6f1   :  { %v504_v59 = vpack.c.bf16 %v503_v58, %v502_v56  ;;  %713 = vrot.lane.b32.xlu1 %v711_v55, %s1643_s21 }
 0x6f3   :  { %578 = vmatmul.bf16.vlgmr.msrb.gmra.mxu2 %v504_v59 }
 0x6f9   :  { %821 = vrot.lane.b32.xlu1 %v1411_v34, %s1643_s21 }
 0x701   :  { %817 = vrot.lane.b32.xlu1 %v1395_v47, %s1643_s21 }
 0x709   :  { %815 = vrot.lane.b32.xlu1 %v1387_v54, %s1643_s21 }
 0x763   :  { %v714_v44 = vpop.permute.xlu1 %713 }
 0x776   :  { %v579_v61 = vpop.f32.mrf.mxu2 }
 0x777   :  { %v580_v62 = vadd.f32 %v579_v61, %v521_v60 }
 0x779   :  { %v1945_v0 = vadd.f32 %v580_v62, %v1869_v20 }
 0x77b   :  { %v586_v1 = vsel %vm98_vm2, %v1945_v0, 0.0 }
 0x77c   :  { %587 = vadd.xlane.f32.xlu2 %v586_v1 }
 0x77e   :  { %v581_v2 = vpop.f32.mrf.mxu2 }
 0x77f   :  { %v582_v5 = vadd.f32 %v581_v2, %v521_v60 }
 0x781   :  { %v1950_v8 = vadd.f32 %v582_v5, %v1874_v26 }
 0x783   :  { %v589_v14 = vsel %vm98_vm2, %v1950_v8, 0.0 }
 0x784   :  { %590 = vadd.xlane.f32.xlu2 %v589_v14 }
 0x7ef   :  { %v588_v19 = vpop.xlane.xlu2 %587 }
 0x7f0   :  { %v592_v3 = vmul.f32 %v588_v19, %v1740_v35 }
 0x7f2   :  { %v1956_v22 = vsub.f32 %v1945_v0, %v592_v3 }
 0x7f4   :  { %v596_v20 = vmul.f32 %v1956_v22, %v1956_v22 }
 0x7f6   :  { %v598_v24 = vsel %vm98_vm2, %v596_v20, 0.0 }
 0x7f7   :  { %599 = vadd.xlane.f32.xlu2 %v598_v24  ;;  %v591_v25 = vpop.xlane.xlu2 %590 }
 0x7f8   :  { %v593_v26 = vmul.f32 %v591_v25, %v1740_v35  ;;  %v630_v25 = vperm.slane %v1937_v27, 2 }
 0x7fa   :  { %v1963_v28 = vsub.f32 %v1950_v8, %v593_v26 }
 0x7fc   :  { %v597_v29 = vmul.f32 %v1963_v28, %v1963_v28 }
 0x7fe   :  { %v601_v30 = vsel %vm98_vm2, %v597_v29, 0.0 }
 0x7ff   :  { %602 = vadd.xlane.f32.xlu2 %v601_v30 }
 0x86a   :  { %v600_v48 = vpop.xlane.xlu2 %599 }
 0x86b   :  { %v604_v57 = vmul.f32 %v600_v48, %v1740_v35 }
 0x86d   :  { %v606_v53 = vadd.f32 1e-05, %v604_v57  ;;  %v708_v57 = vperm.slane %v1937_v27, 4 }
 0x86f   :  { %1579 = vrsqrt.f32 %v606_v53  ;;  %vm614_vm3 = vweird.f32 %v606_v53 }
 0x872   :  { %v603_v43 = vpop.xlane.xlu2 %602 }
 0x873   :  { %v605_v56 = vmul.f32 %v603_v43, %v1740_v35 }
 0x875   :  { %v1580_v58 = vpop.eup %1579  ;;  %v607_v59 = vadd.f32 1e-05, %v605_v56 }
 0x876   :  { %v609_v60 = vmul.f32 %v1580_v58, %v606_v53  ;;  %vm615_vm1 = vweird.f32 %v1580_v58 }
 0x877   :  { %1581 = vrsqrt.f32 %v607_v59  ;;  %vm616_vm4 = vmor %vm614_vm3, %vm615_vm1  ;;  %vm624_vm6 = vweird.f32 %v607_v59 }
 0x878   :  { %v610_v61 = vmul.f32 %v1580_v58, %v609_v60 }
 0x87a   :  { %v611_v62 = vmul.f32 0.5, %v610_v61 }
 0x87c   :  { %v612_v1 = vsub.f32 1.5, %v611_v62 }
 0x87d   :  { %v1582_v2 = vpop.eup %1581 }
 0x87e   :  { %v613_v5 = vmul.f32 %v1580_v58, %v612_v1  ;;  %v619_v14 = vmul.f32 %v1582_v2, %v607_v59  ;;  %vm625_vm5 = vweird.f32 %v1582_v2 }
 0x87f   :  { %vm626_vm7 = vmor %vm624_vm6, %vm625_vm5 }
 0x880   :  { %v620_v19 = vmul.f32 %v1582_v2, %v619_v14  ;;  %v617_v3 = vsel %vm616_vm4, %v1580_v58, %v613_v5 }
 0x881   :  { %v628_v26 = vmul.f32 %v617_v3, %v1956_v22 }
 0x882   :  { %v621_v20 = vmul.f32 0.5, %v620_v19 }
 0x883   :  { %v631_v23 = vmul.f32 %v630_v25, %v628_v26 }
 0x884   :  { %v622_v24 = vsub.f32 1.5, %v621_v20 }
 0x885   :  { %v634_v33 = vadd.f32 %v633_v31, %v631_v23 }
 0x886   :  { %v623_v29 = vmul.f32 %v1582_v2, %v622_v24 }
 0x888   :  { %v627_v30 = vsel %vm626_vm7, %v1582_v2, %v623_v29 }
 0x889   :  { %v629_v15 = vmul.f32 %v627_v30, %v1963_v28 }
 0x88b   :  { %v632_v32 = vmul.f32 %v630_v25, %v629_v15 }
 0x88d   :  { %v635_v34 = vadd.f32 %v633_v31, %v632_v32 }
 0x88f   :  { %v636_v36 = vpack.c.bf16 %v635_v34, %v634_v33 }
 0x891   :  { %1412 = vmatmul.msk.bf16.vlgmr.msra.gmra.mxu3 %vm98_vm2, %v636_v36  ;;  %1413 = vmatmul.msk.bf16.vlgmr.msra.gmra.mxu0 %vm98_vm2, %v636_v36 }
 0x90e   :  { %v703_v22 = vpop.f32.mrf.mxu0 }
 0x90f   :  { %v719_v39 = vadd.f32 %v718_v37, %v703_v22 }
 0x914   :  { %v689_v51 = vpop.f32.mrf.mxu3 }
 0x915   :  { %v716_v45 = vadd.f32 %v714_v44, %v689_v51  ;;  %v709_v38 = vadd.f32 %v708_v57, %v689_v51 }
 0x916   :  { %v705_v63 = vpop.f32.mrf.mxu0 }
 0x917   :  { %v720_v41 = vadd.f32 %v718_v37, %v705_v63 }
 0x919   :  { %v795_v42 = vpack.c.bf16 %v720_v41, %v719_v39 }
 0x91b   :  { %806 = vmatpush.bf16.msrb.mxu3 %v795_v42 }
 0x91c   :  { %v691_v28 = vpop.f32.mrf.mxu3 }
 0x91d   :  { %v717_v46 = vadd.f32 %v714_v44, %v691_v28  ;;  %v710_v12 = vadd.f32 %v708_v57, %v691_v28 }
 0x91f   :  { %v722_v47 = vpack.c.bf16 %v717_v46, %v716_v45  ;;  %v721_v50 = vpack.c.bf16 %v710_v12, %v709_v38  ;;  %v814_v12 = vperm.slane %v1937_v27, 7 }
 0x921   :  { %724 = vrot.lane.b32.xlu0 %v722_v47, %s1643_s21 }
 0x993   :  { %v725_v48 = vpop.permute.xlu0 %724 }
 0x994   :  { %v730_v49 = vsel %vm98_vm2, %v725_v48, 0 }
 0x995   :  { %739 = vmatpush.bf16.xpose.msra.mxu1 %v730_v49 }
 0x99c   :  { %1414 = vmatmul.msk.bf16.vlgmr.msra.gmra.mxu1 %vm98_vm2, %v721_v50 }
 0xa19   :  { %v741_v52 = vpop.f32.mrf.mxu1 }
 0xa1a   :  { %v742_v53 = vadd.f32 %v741_v52, %v1845_v18 }
 0xa1c   :  { %v746_v54 = vsel %vm300_vm14, %v742_v53, -inf }
 0xa1d   :  { %747 = vmax.xlane.f32.xlu2 %v746_v54 }
 0xa21   :  { %v743_v55 = vpop.f32.mrf.mxu1 }
 0xa22   :  { %v744_v43 = vadd.f32 %v743_v55, %v1851_v21  ;;  %v822_v21 = vpop.permute.xlu1 %821 }
 0xa23   :  { %834 = vmatpush.bf16.msrb.mxu0 %v822_v21  ;;  %v1427_v21 = vld [vmem:[%s2182_s1 + $0x88] sm:$0xf] }
 0xa24   :  { %v749_v56 = vsel %vm300_vm14, %v744_v43, -inf }
 0xa25   :  { %750 = vmax.xlane.f32.xlu2 %v749_v56 }
 0xa2a   :  { %v818_v29 = vpop.permute.xlu1 %817 }
 0xa32   :  { %v816_v47 = vpop.permute.xlu1 %815 }
 0xa90   :  { %v748_v58 = vpop.xlane.xlu2 %747 }
 0xa91   :  { %v752_v59 = vsub.f32 %v742_v53, %v748_v58 }
 0xa93   :  { %v754_v60 = vmul.f32 1.442695, %v752_v59 }
 0xa95   :  { %1583 = vpow2.f32 %v754_v60 }
 0xa98   :  { %v751_v61 = vpop.xlane.xlu2 %750 }
 0xa99   :  { %v753_v62 = vsub.f32 %v744_v43, %v751_v61 }
 0xa9b   :  { %v1584_v1 = vpop.eup %1583  ;;  %v756_v2 = vmul.f32 1.442695, %v753_v62 }
 0xa9c   :  { %v758_v5 = vsel %vm300_vm14, %v1584_v1, 0.0 }
 0xa9d   :  { %1585 = vpow2.f32 %v756_v2  ;;  %759 = vadd.xlane.f32.xlu2 %v758_v5  ;;  %v1431_v5 = vld [vmem:[%s2182_s1 + $0xc0] sm:$0xf] }
 0xaa3   :  { %v1586_v18 = vpop.eup %1585 }
 0xaa4   :  { %v761_v14 = vsel %vm300_vm14, %v1586_v18, 0.0 }
 0xaa5   :  { %762 = vadd.xlane.f32.xlu0 %v761_v14 }
 0xab5   :  { %819 = vrot.lane.b32.xlu2 %v1992_v40, %s1643_s21 }
 0xb10   :  { %v760_v19 = vpop.xlane.xlu2 %759 }
 0xb11   :  { %1587 = vrcp.f32 %v760_v19  ;;  %v775_v32 = vand.u32 2147483648, %v760_v19  ;;  %vm769_vm9 = vweird.f32 %v760_v19  ;;  %v773_v40 = vand.u32 2147483647, %v760_v19 }
 0xb13   :  { %v776_v51 = vor.u32 1.1754944e-38, %v775_v32  ;;  %vm774_vm12 = vcmp.eq.f32.partialorder %v773_v40, 8.507059e+37 }
 0xb17   :  { %v1588_v3 = vpop.eup %1587 }
 0xb18   :  { %v765_v20 = vmul.f32 %v1588_v3, %v760_v19  ;;  %v763_v24 = vpop.xlane.xlu0 %762  ;;  %v820_v25 = vpop.permute.xlu2 %819  ;;  %vm770_vm8 = vweird.f32 %v1588_v3  ;;  %v1513_v19 = vld [vmem:[%s2182_s1 + $0xa0] sm:$0xf0] }
 0xb19   :  { %1589 = vrcp.f32 %v763_v24  ;;  %835 = vmatpush.bf16.msrb.mxu0 %v820_v25  ;;  %vm771_vm10 = vmor %vm769_vm9, %vm770_vm8  ;;  %v790_v34 = vand.u32 2147483648, %v763_v24  ;;  %v788_v37 = vand.u32 2147483647, %v763_v24  ;;  %vm784_vm13 = vweird.f32 %v763_v24 }
 0xb1a   :  { %v766_v26 = vsub.f32 1.0, %v765_v20  ;;  %v1423_v20 = vld [vmem:[%s2182_s1 + $0x50] sm:$0xf] }
 0xb1b   :  { %v791_v41 = vor.u32 1.1754944e-38, %v790_v34  ;;  %vm789_vm0 = vcmp.eq.f32.partialorder %v788_v37, 8.507059e+37 }
 0xb1c   :  { %v767_v30 = vmul.f32 %v1588_v3, %v766_v26 }
 0xb1d   :  { %836 = vmatpush.bf16.msrb.mxu0 %v818_v29 }
 0xb1e   :  { %v768_v23 = vadd.f32 %v1588_v3, %v767_v30  ;;  %v1419_v30 = vld [vmem:[%s2182_s1 + $0x18] sm:$0xf] }
 0xb1f   :  { %v1590_v31 = vpop.eup %1589 }
 0xb20   :  { %v780_v15 = vmul.f32 %v1590_v31, %v763_v24  ;;  %v772_v36 = vsel %vm771_vm10, %v1588_v3, %v768_v23  ;;  %vm785_vm11 = vweird.f32 %v1590_v31  ;;  %v1428_v3 = vor.u32 %v1513_v19, %v1427_v21  ;;  %v1506_v24 = vld [vmem:[%s2182_s1 + $0x68] sm:$0xf0] }
 0xb21   :  { %v777_v39 = vsel %vm774_vm12, %v776_v51, %v772_v36  ;;  %vm786_vm15 = vmor %vm784_vm13, %vm785_vm11  ;;  %837 = vmatpush.bf16.msrb.mxu0 %v816_v47  ;;  %v1424_v25 = vor.u32 %v1506_v24, %v1423_v20 }
 0xb22   :  { %v781_v33 = vsub.f32 1.0, %v780_v15  ;;  %v778_v28 = vmul.f32 %v1584_v1, %v777_v39 }
 0xb24   :  { %v782_v22 = vmul.f32 %v1590_v31, %v781_v33 }
 0xb26   :  { %v783_v63 = vadd.f32 %v1590_v31, %v782_v22 }
 0xb28   :  { %v787_v42 = vsel %vm786_vm15, %v1590_v31, %v783_v63  ;;  %v1499_v31 = vld [vmem:[%s2182_s1 + $0x30] sm:$0xf0] }
 0xb29   :  { %v792_v44 = vsel %vm789_vm0, %v791_v41, %v787_v42  ;;  %v1420_v23 = vor.u32 %v1499_v31, %v1419_v30 }
 0xb2a   :  { %v793_v45 = vmul.f32 %v1586_v18, %v792_v44  ;;  %v1520_v18 = vld [vmem:[%s2182_s1 + $0xd8] sm:$0xf0]  ;;  %v2093_v44 = vld [vmem:[%s2184_s3 + $0x20] sm:$0x7f] }
 0xb2b   :  { %v1432_v14 = vor.u32 %v1520_v18, %v1431_v5  ;;  %v890_v47 = vperm.slane %v2093_v44, 0 }
 0xb2c   :  { %v794_v46 = vpack.c.bf16 %v793_v45, %v778_v28 }
 0xb2d   :  { %929 = vmatpush.bf16.msrb.mxu1 %v1432_v14 }
 0xb2e   :  { %1415 = vmatmul.msk.bf16.vlgmr.msrb.gmra.mxu3 %vm300_vm14, %v794_v46 }
 0xb31   :  { %930 = vmatpush.bf16.msrb.mxu1 %v1428_v3 }
 0xb35   :  { %931 = vmatpush.bf16.msrb.mxu1 %v1424_v25 }
 0xb39   :  { %932 = vmatpush.bf16.msrb.mxu1 %v1420_v23 }
 0xbb1   :  { %v808_v48 = vpop.f32.mrf.mxu3 }
 0xbb9   :  { %v810_v57 = vpop.f32.mrf.mxu3 }
 0xbba   :  { %v813_v49 = vpack.c.bf16 %v810_v57, %v808_v48 }
 0xbbc   :  { %1416 = vmatmul.msk.bf16.vlgmr.msrb.gmra.mxu0 %vm98_vm2, %v813_v49 }
 0xc39   :  { %v839_v38 = vpop.f32.mrf.mxu0 }
 0xc3a   :  { %v840_v50 = vadd.f32 %v839_v38, %v814_v12 }
 0xc3c   :  { %v2049_v52 = vadd.f32 %v840_v50, %v1945_v0 }
 0xc3e   :  { %v846_v53 = vsel %vm98_vm2, %v2049_v52, 0.0 }
 0xc3f   :  { %847 = vadd.xlane.f32.xlu1 %v846_v53 }
 0xc41   :  { %v841_v54 = vpop.f32.mrf.mxu0 }
 0xc42   :  { %v842_v55 = vadd.f32 %v841_v54, %v814_v12  ;;  %v893_v12 = vperm.slane %v2093_v44, 1 }
 0xc44   :  { %v2054_v43 = vadd.f32 %v842_v55, %v1950_v8 }
 0xc46   :  { %v849_v56 = vsel %vm98_vm2, %v2054_v43, 0.0 }
 0xc47   :  { %850 = vadd.xlane.f32.xlu2 %v849_v56 }
 0xcb2   :  { %v848_v58 = vpop.xlane.xlu1 %847 }
 0xcb3   :  { %v852_v27 = vmul.f32 %v848_v58, %v1740_v35  ;;  %v1537_v58 = vld [vmem:[%s2183_s2 + $0x78] sm:$0xff] }
 0xcb4   :  { %1024 = vmatpush.bf16.msra.mxu2 %v1537_v58 }
 0xcb5   :  { %v854_v59 = vsub.f32 %v2049_v52, %v852_v27  ;;  %v1536_v27 = vld [vmem:[%s2183_s2 + $0x70] sm:$0xff] }
 0xcb7   :  { %v856_v0 = vmul.f32 %v854_v59, %v854_v59 }
 0xcb8   :  { %1025 = vmatpush.bf16.msra.mxu2 %v1536_v27 }
 0xcb9   :  { %v858_v60 = vsel %vm98_vm2, %v856_v0, 0.0  ;;  %v1534_v0 = vld [vmem:[%s2183_s2 + $0x60] sm:$0xff] }
 0xcba   :  { %v851_v61 = vpop.xlane.xlu2 %850  ;;  %859 = vadd.xlane.f32.xlu0 %v858_v60  ;;  %v1533_v60 = vld [vmem:[%s2183_s2 + $0x58] sm:$0xff] }
 0xcbb   :  { %v853_v62 = vmul.f32 %v851_v61, %v1740_v35  ;;  %v1532_v61 = vld [vmem:[%s2183_s2 + $0x50] sm:$0xff] }
 0xcbd   :  { %v855_v1 = vsub.f32 %v2054_v43, %v853_v62  ;;  %v1531_v62 = vld [vmem:[%s2183_s2 + $0x48] sm:$0xff] }
 0xcbf   :  { %v857_v8 = vmul.f32 %v855_v1, %v855_v1 }
 0xcc1   :  { %v861_v2 = vsel %vm98_vm2, %v857_v8, 0.0  ;;  %v897_v8 = vperm.slane %v2093_v44, 2 }
 0xcc2   :  { %862 = vadd.xlane.f32.xlu0 %v861_v2 }
 0xd2d   :  { %v860_v26 = vpop.xlane.xlu0 %859 }
 0xd2e   :  { %v864_v29 = vmul.f32 %v860_v26, %v1740_v35 }
 0xd30   :  { %v866_v15 = vadd.f32 1e-05, %v864_v29 }
 0xd32   :  { %1591 = vrsqrt.f32 %v866_v15  ;;  %vm874_vm1 = vweird.f32 %v866_v15 }
 0xd35   :  { %v863_v32 = vpop.xlane.xlu0 %862 }
 0xd36   :  { %v865_v40 = vmul.f32 %v863_v32, %v1740_v35 }
 0xd38   :  { %v1592_v33 = vpop.eup %1591  ;;  %v867_v34 = vadd.f32 1e-05, %v865_v40 }
 0xd39   :  { %v869_v36 = vmul.f32 %v1592_v33, %v866_v15  ;;  %vm875_vm14 = vweird.f32 %v1592_v33 }
 0xd3a   :  { %1593 = vrsqrt.f32 %v867_v34  ;;  %vm876_vm3 = vmor %vm874_vm1, %vm875_vm14  ;;  %vm884_vm5 = vweird.f32 %v867_v34 }
 0xd3b   :  { %v870_v22 = vmul.f32 %v1592_v33, %v869_v36 }
 0xd3d   :  { %v871_v37 = vmul.f32 0.5, %v870_v22 }
 0xd3f   :  { %v872_v51 = vsub.f32 1.5, %v871_v37 }
 0xd40   :  { %v1594_v63 = vpop.eup %1593 }
 0xd41   :  { %v873_v39 = vmul.f32 %v1592_v33, %v872_v51  ;;  %v879_v41 = vmul.f32 %v1594_v63, %v867_v34  ;;  %vm885_vm4 = vweird.f32 %v1594_v63  ;;  %v975_v51 = vperm.slane %v2093_v44, 3 }
 0xd42   :  { %vm886_vm6 = vmor %vm884_vm5, %vm885_vm4 }
 0xd43   :  { %v880_v42 = vmul.f32 %v1594_v63, %v879_v41  ;;  %v877_v28 = vsel %vm876_vm3, %v1592_v33, %v873_v39 }
 0xd44   :  { %v888_v48 = vmul.f32 %v877_v28, %v854_v59  ;;  %v1535_v59 = vld [vmem:[%s2183_s2 + $0x68] sm:$0xff] }
 0xd45   :  { %v881_v45 = vmul.f32 0.5, %v880_v42  ;;  %1026 = vmatpush.bf16.msra.mxu2 %v1535_v59 }
 0xd46   :  { %v891_v38 = vmul.f32 %v890_v47, %v888_v48 }
 0xd47   :  { %v882_v46 = vsub.f32 1.5, %v881_v45 }
 0xd48   :  { %v894_v54 = vadd.f32 %v893_v12, %v891_v38 }
 0xd49   :  { %v883_v57 = vmul.f32 %v1594_v63, %v882_v46  ;;  %1027 = vmatpush.bf16.msra.mxu2 %v1534_v0 }
 0xd4b   :  { %v887_v49 = vsel %vm886_vm6, %v1594_v63, %v883_v57 }
 0xd4c   :  { %v889_v50 = vmul.f32 %v887_v49, %v855_v1  ;;  %v1530_v1 = vld [vmem:[%s2183_s2 + $0x40] sm:$0xff] }
 0xd4d   :  { %1028 = vmatpush.bf16.msra.mxu2 %v1533_v60 }
 0xd4e   :  { %v892_v53 = vmul.f32 %v890_v47, %v889_v50 }
 0xd50   :  { %v895_v55 = vadd.f32 %v893_v12, %v892_v53 }
 0xd51   :  { %1029 = vmatpush.bf16.msra.mxu2 %v1532_v61 }
 0xd52   :  { %v896_v56 = vpack.c.bf16 %v895_v55, %v894_v54 }
 0xd54   :  { %1433 = vmatmul.msk.bf16.vlgmr.msrb.gmra.mxu1 %vm98_vm2, %v896_v56 }
 0xd55   :  { %1030 = vmatpush.bf16.msra.mxu2 %v1531_v62 }
 0xd59   :  { %1031 = vmatpush.bf16.msra.mxu2 %v1530_v1 }
 0xdd1   :  { %v934_v2 = vpop.f32.mrf.mxu1 }
 0xdd2   :  { %v935_v5 = vadd.f32 %v934_v2, %v897_v8 }
 0xdd4   :  { %v941_v18 = vmul.f32 %v935_v5, %v935_v5  ;;  %v939_v40 = vmul.f32 0.5, %v935_v5 }
 0xdd6   :  { %v943_v14 = vmul.f32 %v941_v18, %v935_v5 }
 0xdd8   :  { %v945_v21 = vmul.f32 0.044715, %v943_v14 }
 0xdd9   :  { %v936_v19 = vpop.f32.mrf.mxu1 }
 0xdda   :  { %v947_v3 = vadd.f32 %v945_v21, %v935_v5  ;;  %v937_v20 = vadd.f32 %v936_v19, %v897_v8 }
 0xddc   :  { %v942_v24 = vmul.f32 %v937_v20, %v937_v20  ;;  %v949_v25 = vmul.f32 0.7978846, %v947_v3  ;;  %v940_v33 = vmul.f32 0.5, %v937_v20 }
 0xdde   :  { %v944_v26 = vmul.f32 %v942_v24, %v937_v20  ;;  %1595 = vtanh.f32 %v949_v25 }
 0xde0   :  { %v946_v29 = vmul.f32 0.044715, %v944_v26 }
 0xde2   :  { %v948_v30 = vadd.f32 %v946_v29, %v937_v20  ;;  %v1084_v20 = vperm.slane %v2093_v44, 4 }
 0xde4   :  { %v950_v31 = vmul.f32 0.7978846, %v948_v30  ;;  %v1596_v23 = vpop.eup %1595  ;;  %v1087_v30 = vperm.slane %v2093_v44, 5 }
 0xde5   :  { %v953_v15 = vadd.f32 1.0, %v1596_v23 }
 0xde6   :  { %1597 = vtanh.f32 %v950_v31 }
 0xde7   :  { %v955_v36 = vmul.f32 %v953_v15, %v939_v40 }
 0xdec   :  { %v1598_v32 = vpop.eup %1597 }
 0xded   :  { %v954_v34 = vadd.f32 1.0, %v1598_v32 }
 0xdef   :  { %v956_v22 = vmul.f32 %v954_v34, %v940_v33  ;;  %v1139_v34 = vmul.u32 8, %v1688_v6 }
 0xdf1   :  { %v957_v37 = vpack.c.bf16 %v956_v22, %v955_v36  ;;  %v1138_v36 = vadd.s32 56, %v1837_v9  ;;  %v1137_v22 = vadd.s32 48, %v1837_v9 }
 0xdf3   :  { %1032 = vmatmul.bf16.vlgmr.msra.gmra.mxu2 %v957_v37  ;;  %v1147_v37 = vsub.s32 %v1138_v36, %v1139_v34 }
 0xdf5   :  { %vm1155_vm13 = vcmp.ge.s32.totalorder %v1147_v37, 0  ;;  %vm1163_vm15 = vcmp.lt.s32.totalorder %v1147_v37, 8 }
 0xdf6   :  { %vm1171_vm1 = vmand %vm1155_vm13, %vm1163_vm15 }
 0xe76   :  { %v1033_v63 = vpop.f32.mrf.mxu2 }
 0xe77   :  { %v1034_v39 = vadd.f32 %v1033_v63, %v975_v51  ;;  %v1645_v63 = vmov 1.0  }
 0xe78   :  { %1483 = vmatpush.msk.msra.mxu0 %vm1171_vm1, %v1645_v63  ;;  %1538 = vmatpush.msk.msra.mxu1 %vm1171_vm1, %v1645_v63 }
 0xe79   :  { %v1038_v41 = vadd.f32 %v1034_v39, %v2049_v52  ;;  %v1091_v39 = vperm.slane %v2093_v44, 6 }
 0xe7b   :  { %v1040_v42 = vsel %vm98_vm2, %v1038_v41, 0.0 }
 0xe7c   :  { %1041 = vadd.xlane.f32.xlu0 %v1040_v42 }
 0xe7e   :  { %v1035_v28 = vpop.f32.mrf.mxu2 }
 0xe7f   :  { %v1036_v45 = vadd.f32 %v1035_v28, %v975_v51  ;;  %v1146_v51 = vsub.s32 %v1137_v22, %v1139_v34 }
 0xe81   :  { %v1039_v46 = vadd.f32 %v1036_v45, %v2054_v43  ;;  %vm1154_vm0 = vcmp.ge.s32.totalorder %v1146_v51, 0  ;;  %vm1162_vm14 = vcmp.lt.s32.totalorder %v1146_v51, 8 }
 0xe82   :  { %vm1170_vm3 = vmand %vm1154_vm0, %vm1162_vm14 }
 0xe83   :  { %v1043_v47 = vsel %vm98_vm2, %v1039_v46, 0.0  ;;  %1484 = vmatpush.msk.msra.mxu0 %vm1170_vm3, %v1645_v63  ;;  %1539 = vmatpush.msk.msra.mxu1 %vm1170_vm3, %v1645_v63 }
 0xe84   :  { %1044 = vadd.xlane.f32.xlu0 %v1043_v47 }
 0xe98   :  { %1098 = vrot.lane.b32.xlu0 %v1682_v4, %s1643_s21  ;;  %v1613_v4 = vld [vmem:[%s2181_s0] sm:$0xff] }
 0xea0   :  { %1092 = vrot.lane.b32.xlu0 %v1720_v16, %s1643_s21  ;;  %v1614_v16 = vld [vmem:[%s2181_s0 + $0x8] sm:$0xff]  ;;  %s1647_s0 = smov [#allocation2]  }
 0xeef   :  { %v1042_v48 = vpop.xlane.xlu0 %1041 }
 0xef0   :  { %v1046_v57 = vmul.f32 %v1042_v48, %v1740_v35 }
 0xef2   :  { %v1048_v52 = vsub.f32 %v1038_v41, %v1046_v57 }
 0xef4   :  { %v1050_v49 = vmul.f32 %v1048_v52, %v1048_v52 }
 0xef6   :  { %v1052_v12 = vsel %vm98_vm2, %v1050_v49, 0.0 }
 0xef7   :  { %1053 = vadd.xlane.f32.xlu1 %v1052_v12  ;;  %v1045_v38 = vpop.xlane.xlu0 %1044  ;;  %v1135_v12 = vadd.s32 32, %v1837_v9 }
 0xef8   :  { %v1047_v43 = vmul.f32 %v1045_v38, %v1740_v35 }
 0xef9   :  { %v1144_v38 = vsub.s32 %v1135_v12, %v1139_v34 }
 0xefa   :  { %v1049_v50 = vsub.f32 %v1039_v46, %v1047_v43  ;;  %v1134_v43 = vadd.s32 24, %v1837_v9 }
 0xefc   :  { %v1051_v53 = vmul.f32 %v1049_v50, %v1049_v50 }
 0xefe   :  { %v1055_v54 = vsel %vm98_vm2, %v1051_v53, 0.0  ;;  %v1133_v53 = vadd.s32 16, %v1837_v9 }
 0xeff   :  { %1056 = vadd.xlane.f32.xlu2 %v1055_v54 }
 0xf00   :  { %v1142_v54 = vsub.s32 %v1133_v53, %v1139_v34 }
 0xf02   :  { %vm1150_vm15 = vcmp.ge.s32.totalorder %v1142_v54, 0  ;;  %vm1158_vm0 = vcmp.lt.s32.totalorder %v1142_v54, 8 }
 0xf03   :  { %vm1166_vm14 = vmand %vm1150_vm15, %vm1158_vm0 }
 0xf0a   :  { %v1099_v55 = vpop.permute.xlu0 %1098 }
 0xf0b   :  { %1111 = vmatpush.bf16.msra.mxu3 %v1099_v55 }
 0xf10   :  { %1096 = vrot.lane.b32.xlu1 %v1691_v7, %s1643_s21 }
 0xf12   :  { %v1093_v29 = vpop.permute.xlu0 %1092 }
 0xf17   :  { %1094 = vrot.lane.b32.xlu2 %v1709_v13, %s1643_s21 }
 0xf1f   :  { %66 = vrot.lane.b32.xlu2 %v1613_v4, %s1643_s21  ;;  %v1141_v4 = vsub.s32 %v1843_v11, %v1139_v34 }
 0xf21   :  { %vm1149_vm1 = vcmp.ge.s32.totalorder %v1141_v4, 0  ;;  %vm1157_vm3 = vcmp.lt.s32.totalorder %v1141_v4, 8 }
 0xf27   :  { %68 = vrot.lane.b32.xlu2 %v1614_v16, %s1643_s21  ;;  %v1140_v16 = vsub.s32 %v1837_v9, %v1139_v34  ;;  %s1264_s21 = sshll.u32 %s1647_s0, 4  ;;  %s1265_s21 = int_to_ptr.vmem [resolvable:$true] %s1264_s21 }
 0xf6a   :  { %v1054_v56 = vpop.xlane.xlu1 %1053 }
 0xf6b   :  { %v1058_v7 = vmul.f32 %v1054_v56, %v1740_v35 }
 0xf6d   :  { %v1060_v58 = vadd.f32 1e-05, %v1058_v7 }
 0xf6f   :  { %1599 = vrsqrt.f32 %v1060_v58  ;;  %vm1068_vm8 = vweird.f32 %v1060_v58 }
 0xf72   :  { %v1057_v13 = vpop.xlane.xlu2 %1056 }
 0xf73   :  { %v1059_v27 = vmul.f32 %v1057_v13, %v1740_v35 }
 0xf75   :  { %v1600_v59 = vpop.eup %1599  ;;  %v1061_v0 = vadd.f32 1e-05, %v1059_v27 }
 0xf76   :  { %v1063_v60 = vmul.f32 %v1600_v59, %v1060_v58  ;;  %vm1069_vm7 = vweird.f32 %v1600_v59 }
 0xf77   :  { %1601 = vrsqrt.f32 %v1061_v0  ;;  %vm1070_vm9 = vmor %vm1068_vm8, %vm1069_vm7  ;;  %vm1078_vm11 = vweird.f32 %v1061_v0  ;;  %vm1152_vm8 = vcmp.ge.s32.totalorder %v1144_v38, 0 }
 0xf78   :  { %v1064_v61 = vmul.f32 %v1600_v59, %v1063_v60 }
 0xf7a   :  { %v1065_v62 = vmul.f32 0.5, %v1064_v61  ;;  %v1095_v35 = vpop.permute.xlu2 %1094 }
 0xf7c   :  { %v1066_v1 = vsub.f32 1.5, %v1065_v62 }
 0xf7d   :  { %v1602_v8 = vpop.eup %1601 }
 0xf7e   :  { %v1067_v2 = vmul.f32 %v1600_v59, %v1066_v1  ;;  %v1073_v5 = vmul.f32 %v1602_v8, %v1061_v0  ;;  %vm1079_vm10 = vweird.f32 %v1602_v8 }
 0xf7f   :  { %vm1080_vm12 = vmor %vm1078_vm11, %vm1079_vm10 }
 0xf80   :  { %v1074_v18 = vmul.f32 %v1602_v8, %v1073_v5  ;;  %v1071_v14 = vsel %vm1070_vm9, %v1600_v59, %v1067_v2  ;;  %vm1160_vm9 = vcmp.lt.s32.totalorder %v1144_v38, 8 }
 0xf81   :  { %v1082_v24 = vmul.f32 %v1071_v14, %v1048_v52  ;;  %v1136_v52 = vadd.s32 40, %v1837_v9  ;;  %vm1168_vm10 = vmand %vm1152_vm8, %vm1160_vm9  ;;  %vm1215_vm8 = vcmask 64512  }
 0xf82   :  { %v1075_v21 = vmul.f32 0.5, %v1074_v18  ;;  %v1097_v19 = vpop.permute.xlu1 %1096  ;;  %v67_v28 = vpop.permute.xlu2 %66 }
 0xf83   :  { %1112 = vmatpush.bf16.msra.mxu3 %v1097_v19  ;;  %v1085_v31 = vmul.f32 %v1084_v20, %v1082_v24  ;;  %vm70_vm4 = vcmp.eq.s32.totalorder %v1700_v10, %v67_v28  ;;  %v1145_v49 = vsub.s32 %v1136_v52, %v1139_v34 }
 0xf84   :  { %v1076_v3 = vsub.f32 1.5, %v1075_v21  ;;  %v72_v48 = vsel %vm70_vm4, 1.0, %v1641_v17  ;;  %vm1165_vm4 = vmand %vm1149_vm1, %vm1157_vm3 }
 0xf85   :  { %v1088_v32 = vadd.f32 %v1087_v30, %v1085_v31  ;;  %vm1153_vm5 = vcmp.ge.s32.totalorder %v1145_v49, 0  ;;  %vm1161_vm6 = vcmp.lt.s32.totalorder %v1145_v49, 8 }
 0xf86   :  { %v1077_v25 = vmul.f32 %v1602_v8, %v1076_v3  ;;  %vm1169_vm7 = vmand %vm1153_vm5, %vm1161_vm6  ;;  %vm1148_vm5 = vcmp.ge.s32.totalorder %v1140_v16, 0  ;;  %vm1156_vm6 = vcmp.lt.s32.totalorder %v1140_v16, 8 }
 0xf87   :  { %1113 = vmatpush.bf16.msra.mxu3 %v1095_v35  ;;  %1485 = vmatpush.msk.msra.mxu0 %vm1169_vm7, %v1645_v63 }
 0xf88   :  { %v1081_v26 = vsel %vm1080_vm12, %v1602_v8, %v1077_v25  ;;  %1540 = vmatpush.msk.msra.mxu1 %vm1169_vm7, %v1645_v63  ;;  %vm1164_vm7 = vmand %vm1148_vm5, %vm1156_vm6 }
 0xf89   :  { %v1083_v23 = vmul.f32 %v1081_v26, %v1049_v50  ;;  %v1143_v50 = vsub.s32 %v1134_v43, %v1139_v34  ;;  %1486 = vmatpush.msk.msra.mxu0 %vm1168_vm10, %v1645_v63 }
 0xf8a   :  { %1541 = vmatpush.msk.msra.mxu1 %vm1168_vm10, %v1645_v63  ;;  %v69_v1 = vpop.permute.xlu2 %68  ;;  %vm1234_vm10 = vcmask 7168  }
 0xf8b   :  { %v1086_v15 = vmul.f32 %v1084_v20, %v1083_v23  ;;  %1114 = vmatpush.bf16.msra.mxu3 %v1093_v29  ;;  %vm1151_vm11 = vcmp.ge.s32.totalorder %v1143_v50, 0  ;;  %vm1159_vm12 = vcmp.lt.s32.totalorder %v1143_v50, 8  ;;  %vm71_vm9 = vcmp.eq.s32.totalorder %v1700_v10, %v69_v1 }
 0xf8c   :  { %vm1167_vm13 = vmand %vm1151_vm11, %vm1159_vm12  ;;  %v73_v18 = vsel %vm71_vm9, 1.0, %v1641_v17  ;;  %vm1257_vm11 = vcmask 0  }
 0xf8d   :  { %v1089_v40 = vadd.f32 %v1087_v30, %v1086_v15  ;;  %1487 = vmatpush.msk.msra.mxu0 %vm1167_vm13, %v1645_v63  ;;  %1542 = vmatpush.msk.msra.mxu1 %vm1167_vm13, %v1645_v63  ;;  %v1646_v15 = vmov 128.0  }
 0xf8f   :  { %v1090_v33 = vpack.c.bf16 %v1089_v40, %v1088_v32  ;;  %1488 = vmatpush.msk.msra.mxu0 %vm1166_vm14, %v1645_v63  ;;  %1543 = vmatpush.msk.msra.mxu1 %vm1166_vm14, %v1645_v63 }
 0xf91   :  { %1482 = vmatmul.msk.bf16.vlgmr.msra.gmra.mxu3 %vm98_vm2, %v1090_v33  ;;  %1489 = vmatpush.msk.msra.mxu0 %vm1165_vm4, %v1645_v63 }
 0xf92   :  { %1544 = vmatpush.msk.msra.mxu1 %vm1165_vm4, %v1645_v63 }
 0xf93   :  { %1490 = vmatpush.msk.msra.mxu0 %vm1164_vm7, %v1645_v63 }
 0xf94   :  { %1545 = vmatpush.msk.msra.mxu1 %vm1164_vm7, %v1645_v63 }
0x1014   :  { %v1116_v6 = vpop.f32.mrf.mxu3 }
0x1015   :  { %v1117_v41 = vadd.f32 %v1116_v6, %v1091_v39 }
0x1017   :  { %v1121_v42 = vsel %vm98_vm2, %v1117_v41, -inf  ;;  %v1224_v57 = vmul.f32 %v1117_v41, %v72_v48 }
0x1018   :  { %1122 = vmax.xlane.f32.xlu1 %v1121_v42 }
0x1019   :  { %v1226_v44 = vsel %vm98_vm2, %v1224_v57, 0.0 }
0x101c   :  { %v1118_v45 = vpop.f32.mrf.mxu3 }
0x101d   :  { %v2159_v46 = vadd.f32 %v1118_v45, %v1091_v39 }
0x101f   :  { %v1124_v47 = vsel %vm98_vm2, %v2159_v46, -inf  ;;  %v1225_v14 = vmul.f32 %v2159_v46, %v73_v18 }
0x1020   :  { %1125 = vmax.xlane.f32.xlu0 %v1124_v47 }
0x1021   :  { %v1229_v21 = vsel %vm98_vm2, %v1225_v14, 0.0 }
0x1028   :  { %1227 = vadd.xlane.f32.xlu0 %v1226_v44 }
0x108b   :  { %v1123_v55 = vpop.xlane.xlu1 %1122 }
0x108c   :  { %v1127_v56 = vsub.f32 %v1117_v41, %v1123_v55  ;;  %v1209_v35 = vmul.f32 8.0, %v1123_v55 }
0x108e   :  { %v1129_v7 = vmul.f32 1.442695, %v1127_v56 }
0x1090   :  { %1603 = vpow2.f32 %v1129_v7 }
0x1093   :  { %v1126_v11 = vpop.xlane.xlu0 %1125 }
0x1094   :  { %v1128_v58 = vsub.f32 %v2159_v46, %v1126_v11  ;;  %v1210_v24 = vmul.f32 8.0, %v1126_v11 }
0x1096   :  { %v1604_v13 = vpop.eup %1603  ;;  %v1131_v27 = vmul.f32 1.442695, %v1128_v58 }
0x1097   :  { %1491 = vmatmul.msk.f32.vlgmr.msra.gmra.mxu0 %vm98_vm2, %v1604_v13 }
0x1098   :  { %1605 = vpow2.f32 %v1131_v27 }
0x109b   :  { %v1228_v25 = vpop.xlane.xlu0 %1227 }
0x109e   :  { %v1606_v9 = vpop.eup %1605 }
0x109f   :  { %1492 = vmatmul.msk.f32.vlgmr.msra.gmra.mxu1 %vm98_vm2, %v1606_v9 }
0x1114   :  { %v1203_v59 = vpop.f32.mrf.mxu0 }
0x1115   :  { %1607 = vlog2.f32 %v1203_v59 }
0x111b   :  { %v1608_v0 = vpop.eup %1607 }
0x111c   :  { %v1212_v60 = vmul.f32 0.6931472, %v1608_v0  ;;  %v1206_v61 = vpop.f32.mrf.mxu1 }
0x111d   :  { %1609 = vlog2.f32 %v1206_v61 }
0x111e   :  { %v1216_v62 = vsel %vm1215_vm8, %v1212_v60, 0.0  ;;  %1611 = vrcp.f32 %v1646_v15 }
0x111f   :  { %1217 = vadd.xlane.f32.xlu2 %v1216_v62 }
0x1123   :  { %v1610_v8 = vpop.eup %1609 }
0x1124   :  { %v1214_v2 = vmul.f32 0.6931472, %v1610_v8  ;;  %v1612_v32 = vpop.eup %1611 }
0x1125   :  { %v1248_v40 = vmul.f32 128.0, %v1612_v32  ;;  %vm1252_vm2 = vweird.f32 %v1612_v32 }
0x1126   :  { %v1219_v5 = vsel %vm1215_vm8, %v1214_v2, 0.0 }
0x1127   :  { %1220 = vadd.xlane.f32.xlu1 %v1219_v5  ;;  %v1249_v33 = vsub.f32 1.0, %v1248_v40 }
0x1129   :  { %v1250_v37 = vmul.f32 %v1612_v32, %v1249_v33 }
0x112b   :  { %v1251_v39 = vadd.f32 %v1612_v32, %v1250_v37 }
0x112d   :  { %v1253_v42 = vsel %vm1252_vm2, %v1612_v32, %v1251_v39 }
0x112f   :  { %1230 = vadd.xlane.f32.xlu1 %v1229_v21 }
0x1192   :  { %v1218_v19 = vpop.xlane.xlu2 %1217 }
0x1193   :  { %v1222_v20 = vadd.f32 %v1218_v19, %v1209_v35 }
0x1195   :  { %v1232_v26 = vsub.f32 %v1222_v20, %v1228_v25 }
0x1197   :  { %v1235_v31 = vsel %vm1234_vm10, %v1232_v26, 0.0 }
0x119a   :  { %v1221_v3 = vpop.xlane.xlu1 %1220 }
0x119b   :  { %v1223_v29 = vadd.f32 %v1221_v3, %v1210_v24 }
0x11a2   :  { %v1231_v30 = vpop.xlane.xlu1 %1230 }
0x11a3   :  { %v1233_v10 = vsub.f32 %v1223_v29, %v1231_v30 }
0x11a5   :  { %v1236_v23 = vsel %vm1234_vm10, %v1233_v10, 0.0 }
0x11a6   :  { %v1237_v17 = vadd.f32 %v1236_v23, %v1235_v31 }
0x11a8   :  { %1238 = vadd.xlane.f32.xlu0 %v1237_v17 }
0x121b   :  { %v1239_v34 = vpop.xlane.xlu0 %1238 }
0x121c   :  { %v1240_v36 = vrot.slane %v1239_v34, 4 }
0x121e   :  { %v1241_v22 = vadd.f32 %v1240_v36, %v1239_v34 }
0x1220   :  { %v1242_v51 = vrot.slane %v1241_v22, 2 }
0x1222   :  { %v1243_v63 = vadd.f32 %v1242_v51, %v1241_v22 }
0x1224   :  { %v1244_v6 = vrot.slane %v1243_v63, 1 }
0x1226   :  { %v1245_v41 = vadd.f32 %v1244_v6, %v1243_v63 }
0x1228   :  { %1546 = vpush %v1245_v41 }
0x1229   :  { %1548 = vpush %v1253_v42 }
0x1259   :  { %s1547_s23 = spop %1546 }
0x125a   :  { %s1549_s27 = spop %1548 }
0x125b   :  { %s1255_s28 = smul.f32 %s1549_s27, %s1547_s23 }
0x125d   :  { %v1256_v28 = vstv %s1255_s28 }
0x125e   :  { %1258 = vst.msk [vmem:[#allocation2] sm:$0x1] %vm1257_vm11, %v1256_v28 }
0x125f   :  { %1269 = dma.vmem_to_hbm [thread:$0]  %s1265_s21, 16, %s1267_s26, [#allocation3]  }
0x1260   :  { %1639 = dma.done.wait [#allocation3], 16  }
0x1261   :  { %1640 = vsyncadd [#allocation3], 4294967280 }
0x1262   :  { %1274 = vsyncpa [#allocation3], 1 }

</bundles_post_ra>
